<compile_context>
chip_gen: v7x
topology: tpu7x:2x2x1
jax: 0.10.0
libtpu: 0.0.40
codegen_flags: <defaults>
</compile_context>

<pallas_src>
import math
from functools import partial

import jax
import jax.numpy as jnp
from jax.experimental import pallas as pl
from jax.experimental.pallas import tpu as pltpu

_LANE = 128


# ------------------------------ tiling helper -------------------------------

def _pick_tile(dim, candidates):
    """Largest candidate that evenly divides `dim`, else fall back to the full
    dim (a full-extent block is always a legal BlockSpec shape)."""
    for c in candidates:
        if c <= dim and dim % c == 0:
            return c
    return dim


# ----------------------------- Pallas kernels -------------------------------

def _ln_matmul_kernel(x_ref, g_ref, b_ref, w_ref, bias_ref, o_ref, *, gelu):
    # layernorm(x) @ w + bias  [+ tanh-GELU], one (tm, tn) output tile per step.
    x = x_ref[...].astype(jnp.float32)
    mean = jnp.mean(x, axis=-1, keepdims=True)
    xc = x - mean
    var = jnp.mean(xc * xc, axis=-1, keepdims=True)
    xn = xc * jax.lax.rsqrt(var + 1e-5)
    xn = xn * g_ref[...].astype(jnp.float32) + b_ref[...].astype(jnp.float32)
    y = jnp.dot(xn.astype(jnp.bfloat16), w_ref[...],
                preferred_element_type=jnp.float32)
    y = y + bias_ref[...].astype(jnp.float32)
    if gelu:
        c = 0.7978845608028654  # sqrt(2/pi)  -- matches nn.GELU(approximate='tanh')
        y = 0.5 * y * (1.0 + jnp.tanh(c * (y + 0.044715 * (y * y * y))))
    o_ref[...] = y.astype(o_ref.dtype)


def _matmul_residual_kernel(x_ref, w_ref, bias_ref, res_ref, o_ref, acc_ref):
    # x @ w (K-tiled, f32 accumulator) + bias + residual, fused epilogue.
    @pl.when(pl.program_id(2) == 0)
    def _():
        acc_ref[...] = jnp.zeros_like(acc_ref)

    acc_ref[...] += jnp.dot(x_ref[...], w_ref[...],
                            preferred_element_type=jnp.float32)

    @pl.when(pl.program_id(2) == pl.num_programs(2) - 1)
    def _():
        y = (acc_ref[...] + bias_ref[...].astype(jnp.float32)
             + res_ref[...].astype(jnp.float32))
        o_ref[...] = y.astype(o_ref.dtype)


def _ln_lmhead_kernel(x_ref, g_ref, b_ref, wte_ref, o_ref):
    # layernorm(x) @ wte^T, contracting on the embedding axis of BOTH operands,
    # so the tied (V, C) embedding table is never transposed in HBM. No bias.
    x = x_ref[...].astype(jnp.float32)
    mean = jnp.mean(x, axis=-1, keepdims=True)
    xc = x - mean
    var = jnp.mean(xc * xc, axis=-1, keepdims=True)
    xn = xc * jax.lax.rsqrt(var + 1e-5)
    xn = xn * g_ref[...].astype(jnp.float32) + b_ref[...].astype(jnp.float32)
    o_ref[...] = jax.lax.dot_general(
        xn.astype(jnp.bfloat16), wte_ref[...],
        dimension_numbers=(((1,), (1,)), ((), ())),
        preferred_element_type=jnp.float32)


def _flash_attn_kernel(q_ref, k_ref, v_ref, o_ref, m_scr, l_scr, acc_scr, *,
                       heads_per_block, head_dim, tq, tkv,
                       q_base, k_base, v_base, scale):
    qi = pl.program_id(2)
    ki = pl.program_id(3)
    nk = pl.num_programs(3)

    @pl.when(ki == 0)
    def _():
        m_scr[...] = jnp.full(m_scr.shape, -1e30, m_scr.dtype)
        l_scr[...] = jnp.zeros_like(l_scr)
        acc_scr[...] = jnp.zeros_like(acc_scr)

    # Causal skip: kv tiles strictly above the diagonal contribute nothing.
    @pl.when(ki <= qi)
    def _():
        row = qi * tq + jax.lax.broadcasted_iota(jnp.int32, (tq, tkv), 0)
        col = ki * tkv + jax.lax.broadcasted_iota(jnp.int32, (tq, tkv), 1)
        mask = col <= row
        for h in range(heads_per_block):
            qs = q_base + h * head_dim
            ks = k_base + h * head_dim
            vs = v_base + h * head_dim
            # pre-scale q (T*Dh mults instead of T*T), bf16 operands into MXU
            q = (q_ref[0, :, qs:qs + head_dim].astype(jnp.float32)
                 * scale).astype(jnp.bfloat16)
            k = k_ref[0, :, ks:ks + head_dim]
            v = v_ref[0, :, vs:vs + head_dim]
            # contract on the head dim of both operands -> no k.T materialization
            s = jax.lax.dot_general(
                q, k, dimension_numbers=(((1,), (1,)), ((), ())),
                preferred_element_type=jnp.float32)          # (tq, tkv)
            s = jnp.where(mask, s, -1e30)                    # finite mask: no NaNs
            m_prev = m_scr[h]                                # (tq, 1)
            m_new = jnp.maximum(m_prev, jnp.max(s, axis=-1, keepdims=True))
            alpha = jnp.exp(m_prev - m_new)
            p = jnp.exp(s - m_new)
            l_scr[h] = alpha * l_scr[h] + jnp.sum(p, axis=-1, keepdims=True)
            acc_scr[h] = alpha * acc_scr[h] + jnp.dot(
                p.astype(jnp.bfloat16), v, preferred_element_type=jnp.float32)
            m_scr[h] = m_new

    @pl.when(ki == nk - 1)
    def _():
        for h in range(heads_per_block):
            inv_l = pl.reciprocal(l_scr[h], approx=True)     # EUP slot, ~free
            o_ref[0, :, h * head_dim:(h + 1) * head_dim] = (
                acc_scr[h] * inv_l).astype(o_ref.dtype)


# ----------------------------- kernel wrappers -------------------------------

def ln_linear(x2d, gamma, beta, w, bias, *, gelu=False):
    """Fused LayerNorm + Linear(+bias) [+ tanh-GELU].
    x2d: (M, K) bf16; w: (K, N) bf16; gamma/beta: (K,) f32; bias: (N,) f32.
    Full-K blocks (needed for the LN row statistics); M, N tiled."""
    M, K = x2d.shape
    _, N = w.shape
    tm = _pick_tile(M, (256, 128))
    tn = _pick_tile(N, (256, 128))
    return pl.pallas_call(
        partial(_ln_matmul_kernel, gelu=gelu),
        out_shape=jax.ShapeDtypeStruct((M, N), jnp.bfloat16),
        grid=(M // tm, N // tn),
        in_specs=[
            pl.BlockSpec((tm, K), lambda i, j: (i, 0)),
            pl.BlockSpec((1, K), lambda i, j: (0, 0)),
            pl.BlockSpec((1, K), lambda i, j: (0, 0)),
            pl.BlockSpec((K, tn), lambda i, j: (0, j)),
            pl.BlockSpec((1, tn), lambda i, j: (0, j)),
        ],
        out_specs=pl.BlockSpec((tm, tn), lambda i, j: (i, j)),
        compiler_params=pltpu.CompilerParams(
            dimension_semantics=("parallel", "parallel")),
    )(x2d, gamma.reshape(1, K), beta.reshape(1, K), w, bias.reshape(1, N))


def linear_residual(x2d, w, bias, residual):
    """x @ w + bias + residual, K-tiled with an f32 VMEM accumulator."""
    M, K = x2d.shape
    _, N = w.shape
    tm = _pick_tile(M, (256, 128))
    tn = _pick_tile(N, (256, 128))
    tk = _pick_tile(K, (512, 256, 128))
    return pl.pallas_call(
        _matmul_residual_kernel,
        out_shape=jax.ShapeDtypeStruct((M, N), jnp.bfloat16),
        grid=(M // tm, N // tn, K // tk),
        in_specs=[
            pl.BlockSpec((tm, tk), lambda i, j, k: (i, k)),
            pl.BlockSpec((tk, tn), lambda i, j, k: (k, j)),
            pl.BlockSpec((1, tn), lambda i, j, k: (0, j)),
            pl.BlockSpec((tm, tn), lambda i, j, k: (i, j)),
        ],
        out_specs=pl.BlockSpec((tm, tn), lambda i, j, k: (i, j)),
        scratch_shapes=[pltpu.VMEM((tm, tn), jnp.float32)],
        compiler_params=pltpu.CompilerParams(
            dimension_semantics=("parallel", "parallel", "arbitrary")),
    )(x2d, w, bias.reshape(1, N), residual)


def ln_lm_head(x2d, gamma, beta, wte):
    """Final LayerNorm + tied lm_head (x @ wte^T), no bias, f32 logits."""
    M, C = x2d.shape
    V, _ = wte.shape
    tm = _pick_tile(M, (256, 128))
    tn = _pick_tile(V, (512, 256, 128))
    # TODO(synk): for real GPT-2 (V=50257) pad the vocab to a multiple of 128 so
    #             the V axis tiles instead of falling back to a full-V block.
    return pl.pallas_call(
        _ln_lmhead_kernel,
        out_shape=jax.ShapeDtypeStruct((M, V), jnp.float32),
        grid=(M // tm, V // tn),
        in_specs=[
            pl.BlockSpec((tm, C), lambda i, j: (i, 0)),
            pl.BlockSpec((1, C), lambda i, j: (0, 0)),
            pl.BlockSpec((1, C), lambda i, j: (0, 0)),
            pl.BlockSpec((tn, C), lambda i, j: (j, 0)),
        ],
        out_specs=pl.BlockSpec((tm, tn), lambda i, j: (i, j)),
        compiler_params=pltpu.CompilerParams(
            dimension_semantics=("parallel", "parallel")),
    )(x2d, gamma.reshape(1, C), beta.reshape(1, C), wte)


def causal_attention(qkv, n_head):
    """Flash-style causal attention.
    Reads q/k/v directly out of the fused (B, T, 3C) qkv activation via BlockSpec
    index maps and writes the output in (B, T, C) layout (no XLA transposes).
    Heads are grouped so the I/O blocks are lane-dense (>=128) when possible."""
    B, T, C3 = qkv.shape
    C = C3 // 3
    Dh = C // n_head
    scale = 1.0 / math.sqrt(Dh)

    # Head grouping for lane-dense column blocks.
    if Dh % _LANE == 0:
        G, wide = 1, True
    elif _LANE % Dh == 0 and n_head % (_LANE // Dh) == 0:
        G, wide = _LANE // Dh, True
    else:
        G, wide = n_head, False      # small-C fallback: full-width qkv blocks
    HG = n_head // G

    tq = _pick_tile(T, (128, 64, 32, 16, 8))
    tkv = tq

    if wide:
        W = G * Dh                   # multiple of 128
        q_spec = pl.BlockSpec((1, tq, W), lambda b, g, qi, ki: (b, qi, g))
        k_spec = pl.BlockSpec((1, tkv, W), lambda b, g, qi, ki: (b, ki, HG + g))
        v_spec = pl.BlockSpec((1, tkv, W), lambda b, g, qi, ki: (b, ki, 2 * HG + g))
        out_spec = pl.BlockSpec((1, tq, W), lambda b, g, qi, ki: (b, qi, g))
        q_base, k_base, v_base = 0, 0, 0
    else:
        W = C3                       # full last dim (always a legal block shape)
        q_spec = pl.BlockSpec((1, tq, W), lambda b, g, qi, ki: (b, qi, 0))
        k_spec = pl.BlockSpec((1, tkv, W), lambda b, g, qi, ki: (b, ki, 0))
        v_spec = k_spec
        out_spec = pl.BlockSpec((1, tq, C), lambda b, g, qi, ki: (b, qi, 0))
        q_base, k_base, v_base = 0, C, 2 * C

    kernel = partial(_flash_attn_kernel, heads_per_block=G, head_dim=Dh,
                     tq=tq, tkv=tkv, q_base=q_base, k_base=k_base,
                     v_base=v_base, scale=scale)
    return pl.pallas_call(
        kernel,
        out_shape=jax.ShapeDtypeStruct((B, T, C), jnp.bfloat16),
        grid=(B, HG, T // tq, T // tkv),
        in_specs=[q_spec, k_spec, v_spec],
        out_specs=out_spec,
        scratch_shapes=[
            pltpu.VMEM((G, tq, 1), jnp.float32),    # running max
            pltpu.VMEM((G, tq, 1), jnp.float32),    # running denom
            pltpu.VMEM((G, tq, Dh), jnp.float32),   # output accumulator
        ],
        compiler_params=pltpu.CompilerParams(
            dimension_semantics=("parallel", "parallel", "parallel", "arbitrary")),
    )(qkv, qkv, qkv)


# ----------------------------- parameter init --------------------------------

def init_params(key, *, vocab_size, block_size, n_layer, n_head, n_embd):
    C = n_embd
    std = 0.02
    proj_std = 0.02 * (2 * n_layer) ** (-0.5)   # MYGPT2_SCALE_INIT
    keys = iter(jax.random.split(key, 2 + 4 * n_layer))

    def nrm(k, shape, s):
        return (s * jax.random.normal(k, shape, jnp.float32)).astype(jnp.bfloat16)

    params = {
        "wte": nrm(next(keys), (vocab_size, C), std),
        "wpe": nrm(next(keys), (block_size, C), std),
        "ln_f_g": jnp.ones((C,), jnp.float32),
        "ln_f_b": jnp.zeros((C,), jnp.float32),
        "h": [],
    }
    for _ in range(n_layer):
        layer = {
            "ln1_g": jnp.ones((C,), jnp.float32),
            "ln1_b": jnp.zeros((C,), jnp.float32),
            # weights stored (in, out): kernel computes x @ W (== torch x @ W.T)
            "attn_w": nrm(next(keys), (C, 3 * C), std),
            "attn_b": jnp.zeros((3 * C,), jnp.float32),
            "attn_proj_w": nrm(next(keys), (C, C), proj_std),
            "attn_proj_b": jnp.zeros((C,), jnp.float32),
            "ln2_g": jnp.ones((C,), jnp.float32),
            "ln2_b": jnp.zeros((C,), jnp.float32),
            "fc_w": nrm(next(keys), (C, 4 * C), std),
            "fc_b": jnp.zeros((4 * C,), jnp.float32),
            "mlp_proj_w": nrm(next(keys), (4 * C, C), proj_std),
            "mlp_proj_b": jnp.zeros((C,), jnp.float32),
        }
        params["h"].append(layer)
    # lm_head weight is tied to wte (weight sharing), no bias.
    return params


# ------------------------------ forward pass ---------------------------------

def block_forward(p, x2d, B, T, n_head):
    C = x2d.shape[1]
    # attention branch: (LN1 + qkv proj) -> flash attention -> (proj + residual)
    qkv = ln_linear(x2d, p["ln1_g"], p["ln1_b"], p["attn_w"], p["attn_b"])
    y = causal_attention(qkv.reshape(B, T, 3 * C), n_head)         # (B, T, C)
    x2d = linear_residual(y.reshape(B * T, C),
                          p["attn_proj_w"], p["attn_proj_b"], x2d)
    # MLP branch: (LN2 + fc + tanh-GELU) -> (proj + residual)
    h = ln_linear(x2d, p["ln2_g"], p["ln2_b"], p["fc_w"], p["fc_b"], gelu=True)
    x2d = linear_residual(h, p["mlp_proj_w"], p["mlp_proj_b"], x2d)
    return x2d


def gpt_forward(params, idx, n_head):
    B, T = idx.shape
    V, C = params["wte"].shape
    # token / position embedding gather kept as XLA glue (data-dependent gather)
    tok_emb = params["wte"][idx]                         # (B, T, C) bf16
    pos_emb = params["wpe"][:T]                          # (T, C)    bf16
    x2d = (tok_emb + pos_emb[None, :, :]).astype(jnp.bfloat16).reshape(B * T, C)
    for layer in params["h"]:
        x2d = block_forward(layer, x2d, B, T, n_head)
    logits = ln_lm_head(x2d, params["ln_f_g"], params["ln_f_b"], params["wte"])
    # TODO(synk): cross-entropy loss path (targets) not exercised (targets=None).
    return logits.reshape(B, T, V), None


# ----------------------------------- main -------------------------------------

if __name__ == "__main__":
    # small, TPU-friendly config consistent with the GPTConfig structure
    vocab_size = 128
    block_size = 16
    n_layer = 2
    n_head = 2
    n_embd = 32
    B, T = 2, 8

    key = jax.random.PRNGKey(0)
    k_params, k_tokens = jax.random.split(key)

    params = init_params(k_params, vocab_size=vocab_size, block_size=block_size,
                         n_layer=n_layer, n_head=n_head, n_embd=n_embd)
    idx = jax.random.randint(k_tokens, (B, T), 0, vocab_size, dtype=jnp.int32)

    fwd = jax.jit(partial(gpt_forward, n_head=n_head))
    logits, loss = fwd(params, idx)
    logits = jax.block_until_ready(logits)

    assert logits.shape == (B, T, vocab_size)
    assert logits.dtype == jnp.float32
    assert bool(jnp.all(jnp.isfinite(logits)))
    print("KERNEL_OK")
</pallas_src>

<mosaic_0001>
module attributes {stable_mosaic.version = 11 : i64} {
  func.func @_ln_matmul_kernel(%arg0: i32, %arg1: i32, %arg2: memref<16x32xbf16, #tpu.memory_space<vmem>>, %arg3: memref<1x32xf32, #tpu.memory_space<vmem>>, %arg4: memref<1x32xf32, #tpu.memory_space<vmem>>, %arg5: memref<32x96xbf16, #tpu.memory_space<vmem>>, %arg6: memref<1x96xf32, #tpu.memory_space<vmem>>, %arg7: memref<16x96xbf16, #tpu.memory_space<vmem>>) attributes {dimension_semantics = [#tpu.dimension_semantics<parallel>, #tpu.dimension_semantics<parallel>], iteration_bounds = array<i64: 1, 1>, scalar_prefetch = 0 : i64, scratch_operands = 0 : i64, tpu.core_type = #tpu.core_type<tc>, window_params = [{transform_indices = @transform_0, window_bounds = array<i64: 16, 32>}, {pipeline_mode = #tpu.pipeline_mode<synchronous>, transform_indices = @transform_1, window_bounds = array<i64: 1, 32>}, {pipeline_mode = #tpu.pipeline_mode<synchronous>, transform_indices = @transform_2, window_bounds = array<i64: 1, 32>}, {transform_indices = @transform_3, window_bounds = array<i64: 32, 96>}, {transform_indices = @transform_4, window_bounds = array<i64: 1, 96>}, {transform_indices = @transform_5, window_bounds = array<i64: 16, 96>}]} {
    %c0 = arith.constant 0 : index
    %c0_0 = arith.constant 0 : index
    %0 = vector.load %arg2[%c0, %c0_0] : memref<16x32xbf16, #tpu.memory_space<vmem>>, vector<16x32xbf16>
    %1 = arith.extf %0 : vector<16x32xbf16> to vector<16x32xf32>
    %cst = arith.constant dense<0.000000e+00> : vector<16xf32>
    %2 = vector.multi_reduction <add>, %1, %cst [1] : vector<16x32xf32> to vector<16xf32>
    %3 = vector.shape_cast %2 : vector<16xf32> to vector<16x1xf32>
    %cst_1 = arith.constant 3.200000e+01 : f32
    %4 = vector.broadcast %cst_1 : f32 to vector<16x1xf32>
    %5 = arith.divf %3, %4 : vector<16x1xf32>
    %6 = vector.broadcast %5 : vector<16x1xf32> to vector<16x32xf32>
    %7 = arith.subf %1, %6 : vector<16x32xf32>
    %8 = arith.mulf %7, %7 : vector<16x32xf32>
    %cst_2 = arith.constant dense<0.000000e+00> : vector<16xf32>
    %9 = vector.multi_reduction <add>, %8, %cst_2 [1] : vector<16x32xf32> to vector<16xf32>
    %10 = vector.shape_cast %9 : vector<16xf32> to vector<16x1xf32>
    %cst_3 = arith.constant 3.200000e+01 : f32
    %11 = vector.broadcast %cst_3 : f32 to vector<16x1xf32>
    %12 = arith.divf %10, %11 : vector<16x1xf32>
    %cst_4 = arith.constant 9.99999974E-6 : f32
    %13 = vector.broadcast %cst_4 : f32 to vector<16x1xf32>
    %14 = arith.addf %12, %13 : vector<16x1xf32>
    %15 = math.rsqrt %14 : vector<16x1xf32>
    %16 = vector.broadcast %15 : vector<16x1xf32> to vector<16x32xf32>
    %17 = arith.mulf %7, %16 : vector<16x32xf32>
    %c0_5 = arith.constant 0 : index
    %c0_6 = arith.constant 0 : index
    %18 = vector.load %arg3[%c0_5, %c0_6] : memref<1x32xf32, #tpu.memory_space<vmem>>, vector<1x32xf32>
    %19 = vector.broadcast %18 : vector<1x32xf32> to vector<16x32xf32>
    %20 = arith.mulf %17, %19 : vector<16x32xf32>
    %c0_7 = arith.constant 0 : index
    %c0_8 = arith.constant 0 : index
    %21 = vector.load %arg4[%c0_7, %c0_8] : memref<1x32xf32, #tpu.memory_space<vmem>>, vector<1x32xf32>
    %22 = vector.broadcast %21 : vector<1x32xf32> to vector<16x32xf32>
    %23 = arith.addf %20, %22 : vector<16x32xf32>
    %24 = arith.truncf %23 : vector<16x32xf32> to vector<16x32xbf16>
    %c0_9 = arith.constant 0 : index
    %c0_10 = arith.constant 0 : index
    %25 = vector.load %arg5[%c0_9, %c0_10] : memref<32x96xbf16, #tpu.memory_space<vmem>>, vector<32x96xbf16>
    %cst_11 = arith.constant dense<0.000000e+00> : vector<16x96xf32>
    %26 = tpu.matmul %24, %25, %cst_11 {dimension_numbers = #tpu.dot_dimension_numbers<[1], [0], [0], [1], [0, 0, 1, 1], [], []>} : vector<16x32xbf16>, vector<32x96xbf16>, vector<16x96xf32> -> vector<16x96xf32>
    %c0_12 = arith.constant 0 : index
    %c0_13 = arith.constant 0 : index
    %27 = vector.load %arg6[%c0_12, %c0_13] : memref<1x96xf32, #tpu.memory_space<vmem>>, vector<1x96xf32>
    %28 = vector.broadcast %27 : vector<1x96xf32> to vector<16x96xf32>
    %29 = arith.addf %26, %28 : vector<16x96xf32>
    %30 = arith.truncf %29 : vector<16x96xf32> to vector<16x96xbf16>
    %c0_14 = arith.constant 0 : index
    %c0_15 = arith.constant 0 : index
    %31 = vector.load %arg7[%c0_14, %c0_15] : memref<16x96xbf16, #tpu.memory_space<vmem>>, vector<16x96xbf16>
    tpu.vector_store %arg7[%c0_14, %c0_15], %30 {strides = array<i32>} : memref<16x96xbf16, #tpu.memory_space<vmem>>, vector<16x96xbf16>,
    return
  }
  func.func @transform_0(%arg0: i32, %arg1: i32) -> (i32, i32) {
    %c0_i32 = arith.constant 0 : i32
    %c0_i32_0 = arith.constant 0 : i32
    return %arg0, %c0_i32 : i32, i32
  }
  func.func @transform_1(%arg0: i32, %arg1: i32) -> (i32, i32) {
    %c0_i32 = arith.constant 0 : i32
    %c0_i32_0 = arith.constant 0 : i32
    %c0_i32_1 = arith.constant 0 : i32
    return %c0_i32, %c0_i32_0 : i32, i32
  }
  func.func @transform_2(%arg0: i32, %arg1: i32) -> (i32, i32) {
    %c0_i32 = arith.constant 0 : i32
    %c0_i32_0 = arith.constant 0 : i32
    %c0_i32_1 = arith.constant 0 : i32
    return %c0_i32, %c0_i32_0 : i32, i32
  }
  func.func @transform_3(%arg0: i32, %arg1: i32) -> (i32, i32) {
    %c0_i32 = arith.constant 0 : i32
    %c0_i32_0 = arith.constant 0 : i32
    return %c0_i32, %arg1 : i32, i32
  }
  func.func @transform_4(%arg0: i32, %arg1: i32) -> (i32, i32) {
    %c0_i32 = arith.constant 0 : i32
    %c0_i32_0 = arith.constant 0 : i32
    return %c0_i32, %arg1 : i32, i32
  }
  func.func @transform_5(%arg0: i32, %arg1: i32) -> (i32, i32) {
    %c0_i32 = arith.constant 0 : i32
    return %arg0, %arg1 : i32, i32
  }
}

module attributes {stable_mosaic.version = 11 : i64} {
  func.func @_matmul_residual_kernel(%arg0: i32, %arg1: i32, %arg2: i32, %arg3: memref<16x32xbf16, #tpu.memory_space<vmem>>, %arg4: memref<32x32xbf16, #tpu.memory_space<vmem>>, %arg5: memref<1x32xf32, #tpu.memory_space<vmem>>, %arg6: memref<16x32xbf16, #tpu.memory_space<vmem>>, %arg7: memref<16x32xbf16, #tpu.memory_space<vmem>>, %arg8: memref<16x32xf32, #tpu.memory_space<vmem>>) attributes {dimension_semantics = [#tpu.dimension_semantics<parallel>, #tpu.dimension_semantics<parallel>, #tpu.dimension_semantics<arbitrary>], iteration_bounds = array<i64: 1, 1, 1>, scalar_prefetch = 0 : i64, scratch_operands = 1 : i64, tpu.core_type = #tpu.core_type<tc>, window_params = [{transform_indices = @transform_0, window_bounds = array<i64: 16, 32>}, {transform_indices = @transform_1, window_bounds = array<i64: 32, 32>}, {transform_indices = @transform_2, window_bounds = array<i64: 1, 32>}, {transform_indices = @transform_3, window_bounds = array<i64: 16, 32>}, {transform_indices = @transform_4, window_bounds = array<i64: 16, 32>}]} {
    %c0_i32 = arith.constant 0 : i32
    %0 = arith.cmpi eq, %arg2, %c0_i32 : i32
    %1 = arith.extui %0 : i1 to i32
    %c0_i32_0 = arith.constant 0 : i32
    %2 = arith.cmpi ne, %1, %c0_i32_0 : i32
    scf.if %2 {
      %cst_10 = arith.constant 0.000000e+00 : f32
      %12 = vector.broadcast %cst_10 : f32 to vector<16x32xf32>
      %c0_11 = arith.constant 0 : index
      %c0_12 = arith.constant 0 : index
      %13 = vector.load %arg8[%c0_11, %c0_12] : memref<16x32xf32, #tpu.memory_space<vmem>>, vector<16x32xf32>
      tpu.vector_store %arg8[%c0_11, %c0_12], %12 {strides = array<i32>} : memref<16x32xf32, #tpu.memory_space<vmem>>, vector<16x32xf32>,
    } else {
    }
    %c0 = arith.constant 0 : index
    %c0_1 = arith.constant 0 : index
    %3 = vector.load %arg8[%c0, %c0_1] : memref<16x32xf32, #tpu.memory_space<vmem>>, vector<16x32xf32>
    %c0_2 = arith.constant 0 : index
    %c0_3 = arith.constant 0 : index
    %4 = vector.load %arg3[%c0_2, %c0_3] : memref<16x32xbf16, #tpu.memory_space<vmem>>, vector<16x32xbf16>
    %c0_4 = arith.constant 0 : index
    %c0_5 = arith.constant 0 : index
    %5 = vector.load %arg4[%c0_4, %c0_5] : memref<32x32xbf16, #tpu.memory_space<vmem>>, vector<32x32xbf16>
    %cst = arith.constant dense<0.000000e+00> : vector<16x32xf32>
    %6 = tpu.matmul %4, %5, %cst {dimension_numbers = #tpu.dot_dimension_numbers<[1], [0], [0], [1], [0, 0, 1, 1], [], []>} : vector<16x32xbf16>, vector<32x32xbf16>, vector<16x32xf32> -> vector<16x32xf32>
    %7 = arith.addf %3, %6 : vector<16x32xf32>
    %c0_6 = arith.constant 0 : index
    %c0_7 = arith.constant 0 : index
    %8 = vector.load %arg8[%c0_6, %c0_7] : memref<16x32xf32, #tpu.memory_space<vmem>>, vector<16x32xf32>
    tpu.vector_store %arg8[%c0_6, %c0_7], %7 {strides = array<i32>} : memref<16x32xf32, #tpu.memory_space<vmem>>, vector<16x32xf32>,
    %c0_i32_8 = arith.constant 0 : i32
    %9 = arith.cmpi eq, %arg2, %c0_i32_8 : i32
    %10 = arith.extui %9 : i1 to i32
    %c0_i32_9 = arith.constant 0 : i32
    %11 = arith.cmpi ne, %10, %c0_i32_9 : i32
    scf.if %11 {
      %c0_10 = arith.constant 0 : index
      %c0_11 = arith.constant 0 : index
      %12 = vector.load %arg8[%c0_10, %c0_11] : memref<16x32xf32, #tpu.memory_space<vmem>>, vector<16x32xf32>
      %c0_12 = arith.constant 0 : index
      %c0_13 = arith.constant 0 : index
      %13 = vector.load %arg5[%c0_12, %c0_13] : memref<1x32xf32, #tpu.memory_space<vmem>>, vector<1x32xf32>
      %14 = vector.broadcast %13 : vector<1x32xf32> to vector<16x32xf32>
      %15 = arith.addf %12, %14 : vector<16x32xf32>
      %c0_14 = arith.constant 0 : index
      %c0_15 = arith.constant 0 : index
      %16 = vector.load %arg6[%c0_14, %c0_15] : memref<16x32xbf16, #tpu.memory_space<vmem>>, vector<16x32xbf16>
      %17 = arith.extf %16 : vector<16x32xbf16> to vector<16x32xf32>
      %18 = arith.addf %15, %17 : vector<16x32xf32>
      %19 = arith.truncf %18 : vector<16x32xf32> to vector<16x32xbf16>
      %c0_16 = arith.constant 0 : index
      %c0_17 = arith.constant 0 : index
      %20 = vector.load %arg7[%c0_16, %c0_17] : memref<16x32xbf16, #tpu.memory_space<vmem>>, vector<16x32xbf16>
      tpu.vector_store %arg7[%c0_16, %c0_17], %19 {strides = array<i32>} : memref<16x32xbf16, #tpu.memory_space<vmem>>, vector<16x32xbf16>,
    } else {
    }
    return
  }
  func.func @transform_0(%arg0: i32, %arg1: i32, %arg2: i32) -> (i32, i32) {
    %c0_i32 = arith.constant 0 : i32
    return %arg0, %arg2 : i32, i32
  }
  func.func @transform_1(%arg0: i32, %arg1: i32, %arg2: i32) -> (i32, i32) {
    %c0_i32 = arith.constant 0 : i32
    return %arg2, %arg1 : i32, i32
  }
  func.func @transform_2(%arg0: i32, %arg1: i32, %arg2: i32) -> (i32, i32) {
    %c0_i32 = arith.constant 0 : i32
    %c0_i32_0 = arith.constant 0 : i32
    return %c0_i32, %arg1 : i32, i32
  }
  func.func @transform_3(%arg0: i32, %arg1: i32, %arg2: i32) -> (i32, i32) {
    %c0_i32 = arith.constant 0 : i32
    return %arg0, %arg1 : i32, i32
  }
  func.func @transform_4(%arg0: i32, %arg1: i32, %arg2: i32) -> (i32, i32) {
    %c0_i32 = arith.constant 0 : i32
    return %arg0, %arg1 : i32, i32
  }
}

module attributes {stable_mosaic.version = 11 : i64} {
  func.func @_ln_matmul_kernel(%arg0: i32, %arg1: i32, %arg2: memref<16x32xbf16, #tpu.memory_space<vmem>>, %arg3: memref<1x32xf32, #tpu.memory_space<vmem>>, %arg4: memref<1x32xf32, #tpu.memory_space<vmem>>, %arg5: memref<32x128xbf16, #tpu.memory_space<vmem>>, %arg6: memref<1x128xf32, #tpu.memory_space<vmem>>, %arg7: memref<16x128xbf16, #tpu.memory_space<vmem>>) attributes {dimension_semantics = [#tpu.dimension_semantics<parallel>, #tpu.dimension_semantics<parallel>], iteration_bounds = array<i64: 1, 1>, scalar_prefetch = 0 : i64, scratch_operands = 0 : i64, tpu.core_type = #tpu.core_type<tc>, window_params = [{transform_indices = @transform_0, window_bounds = array<i64: 16, 32>}, {pipeline_mode = #tpu.pipeline_mode<synchronous>, transform_indices = @transform_1, window_bounds = array<i64: 1, 32>}, {pipeline_mode = #tpu.pipeline_mode<synchronous>, transform_indices = @transform_2, window_bounds = array<i64: 1, 32>}, {transform_indices = @transform_3, window_bounds = array<i64: 32, 128>}, {transform_indices = @transform_4, window_bounds = array<i64: 1, 128>}, {transform_indices = @transform_5, window_bounds = array<i64: 16, 128>}]} {
    %c0 = arith.constant 0 : index
    %c0_0 = arith.constant 0 : index
    %0 = vector.load %arg2[%c0, %c0_0] : memref<16x32xbf16, #tpu.memory_space<vmem>>, vector<16x32xbf16>
    %1 = arith.extf %0 : vector<16x32xbf16> to vector<16x32xf32>
    %cst = arith.constant dense<0.000000e+00> : vector<16xf32>
    %2 = vector.multi_reduction <add>, %1, %cst [1] : vector<16x32xf32> to vector<16xf32>
    %3 = vector.shape_cast %2 : vector<16xf32> to vector<16x1xf32>
    %cst_1 = arith.constant 3.200000e+01 : f32
    %4 = vector.broadcast %cst_1 : f32 to vector<16x1xf32>
    %5 = arith.divf %3, %4 : vector<16x1xf32>
    %6 = vector.broadcast %5 : vector<16x1xf32> to vector<16x32xf32>
    %7 = arith.subf %1, %6 : vector<16x32xf32>
    %8 = arith.mulf %7, %7 : vector<16x32xf32>
    %cst_2 = arith.constant dense<0.000000e+00> : vector<16xf32>
    %9 = vector.multi_reduction <add>, %8, %cst_2 [1] : vector<16x32xf32> to vector<16xf32>
    %10 = vector.shape_cast %9 : vector<16xf32> to vector<16x1xf32>
    %cst_3 = arith.constant 3.200000e+01 : f32
    %11 = vector.broadcast %cst_3 : f32 to vector<16x1xf32>
    %12 = arith.divf %10, %11 : vector<16x1xf32>
    %cst_4 = arith.constant 9.99999974E-6 : f32
    %13 = vector.broadcast %cst_4 : f32 to vector<16x1xf32>
    %14 = arith.addf %12, %13 : vector<16x1xf32>
    %15 = math.rsqrt %14 : vector<16x1xf32>
    %16 = vector.broadcast %15 : vector<16x1xf32> to vector<16x32xf32>
    %17 = arith.mulf %7, %16 : vector<16x32xf32>
    %c0_5 = arith.constant 0 : index
    %c0_6 = arith.constant 0 : index
    %18 = vector.load %arg3[%c0_5, %c0_6] : memref<1x32xf32, #tpu.memory_space<vmem>>, vector<1x32xf32>
    %19 = vector.broadcast %18 : vector<1x32xf32> to vector<16x32xf32>
    %20 = arith.mulf %17, %19 : vector<16x32xf32>
    %c0_7 = arith.constant 0 : index
    %c0_8 = arith.constant 0 : index
    %21 = vector.load %arg4[%c0_7, %c0_8] : memref<1x32xf32, #tpu.memory_space<vmem>>, vector<1x32xf32>
    %22 = vector.broadcast %21 : vector<1x32xf32> to vector<16x32xf32>
    %23 = arith.addf %20, %22 : vector<16x32xf32>
    %24 = arith.truncf %23 : vector<16x32xf32> to vector<16x32xbf16>
    %c0_9 = arith.constant 0 : index
    %c0_10 = arith.constant 0 : index
    %25 = vector.load %arg5[%c0_9, %c0_10] : memref<32x128xbf16, #tpu.memory_space<vmem>>, vector<32x128xbf16>
    %cst_11 = arith.constant dense<0.000000e+00> : vector<16x128xf32>
    %26 = tpu.matmul %24, %25, %cst_11 {dimension_numbers = #tpu.dot_dimension_numbers<[1], [0], [0], [1], [0, 0, 1, 1], [], []>} : vector<16x32xbf16>, vector<32x128xbf16>, vector<16x128xf32> -> vector<16x128xf32>
    %c0_12 = arith.constant 0 : index
    %c0_13 = arith.constant 0 : index
    %27 = vector.load %arg6[%c0_12, %c0_13] : memref<1x128xf32, #tpu.memory_space<vmem>>, vector<1x128xf32>
    %28 = vector.broadcast %27 : vector<1x128xf32> to vector<16x128xf32>
    %29 = arith.addf %26, %28 : vector<16x128xf32>
    %cst_14 = arith.constant 5.000000e-01 : f32
    %30 = vector.broadcast %cst_14 : f32 to vector<16x128xf32>
    %31 = arith.mulf %30, %29 : vector<16x128xf32>
    %32 = arith.mulf %29, %29 : vector<16x128xf32>
    %33 = arith.mulf %32, %29 : vector<16x128xf32>
    %cst_15 = arith.constant 4.471500e-02 : f32
    %34 = vector.broadcast %cst_15 : f32 to vector<16x128xf32>
    %35 = arith.mulf %34, %33 : vector<16x128xf32>
    %36 = arith.addf %29, %35 : vector<16x128xf32>
    %cst_16 = arith.constant 0.797884583 : f32
    %37 = vector.broadcast %cst_16 : f32 to vector<16x128xf32>
    %38 = arith.mulf %37, %36 : vector<16x128xf32>
    %39 = math.tanh %38 : vector<16x128xf32>
    %cst_17 = arith.constant 1.000000e+00 : f32
    %40 = vector.broadcast %cst_17 : f32 to vector<16x128xf32>
    %41 = arith.addf %40, %39 : vector<16x128xf32>
    %42 = arith.mulf %31, %41 : vector<16x128xf32>
    %43 = arith.truncf %42 : vector<16x128xf32> to vector<16x128xbf16>
    %c0_18 = arith.constant 0 : index
    %c0_19 = arith.constant 0 : index
    %44 = vector.load %arg7[%c0_18, %c0_19] : memref<16x128xbf16, #tpu.memory_space<vmem>>, vector<16x128xbf16>
    tpu.vector_store %arg7[%c0_18, %c0_19], %43 {strides = array<i32>} : memref<16x128xbf16, #tpu.memory_space<vmem>>, vector<16x128xbf16>,
    return
  }
  func.func @transform_0(%arg0: i32, %arg1: i32) -> (i32, i32) {
    %c0_i32 = arith.constant 0 : i32
    %c0_i32_0 = arith.constant 0 : i32
    return %arg0, %c0_i32 : i32, i32
  }
  func.func @transform_1(%arg0: i32, %arg1: i32) -> (i32, i32) {
    %c0_i32 = arith.constant 0 : i32
    %c0_i32_0 = arith.constant 0 : i32
    %c0_i32_1 = arith.constant 0 : i32
    return %c0_i32, %c0_i32_0 : i32, i32
  }
  func.func @transform_2(%arg0: i32, %arg1: i32) -> (i32, i32) {
    %c0_i32 = arith.constant 0 : i32
    %c0_i32_0 = arith.constant 0 : i32
    %c0_i32_1 = arith.constant 0 : i32
    return %c0_i32, %c0_i32_0 : i32, i32
  }
  func.func @transform_3(%arg0: i32, %arg1: i32) -> (i32, i32) {
    %c0_i32 = arith.constant 0 : i32
    %c0_i32_0 = arith.constant 0 : i32
    return %c0_i32, %arg1 : i32, i32
  }
  func.func @transform_4(%arg0: i32, %arg1: i32) -> (i32, i32) {
    %c0_i32 = arith.constant 0 : i32
    %c0_i32_0 = arith.constant 0 : i32
    return %c0_i32, %arg1 : i32, i32
  }
  func.func @transform_5(%arg0: i32, %arg1: i32) -> (i32, i32) {
    %c0_i32 = arith.constant 0 : i32
    return %arg0, %arg1 : i32, i32
  }
}

module attributes {stable_mosaic.version = 11 : i64} {
  func.func @_flash_attn_kernel(%arg0: i32, %arg1: i32, %arg2: i32, %arg3: i32, %arg4: memref<1x8x96xbf16, #tpu.memory_space<vmem>>, %arg5: memref<1x8x96xbf16, #tpu.memory_space<vmem>>, %arg6: memref<1x8x96xbf16, #tpu.memory_space<vmem>>, %arg7: memref<1x8x32xbf16, #tpu.memory_space<vmem>>, %arg8: memref<2x8x1xf32, #tpu.memory_space<vmem>>, %arg9: memref<2x8x1xf32, #tpu.memory_space<vmem>>, %arg10: memref<2x8x16xf32, #tpu.memory_space<vmem>>) attributes {dimension_semantics = [#tpu.dimension_semantics<parallel>, #tpu.dimension_semantics<parallel>, #tpu.dimension_semantics<parallel>, #tpu.dimension_semantics<arbitrary>], iteration_bounds = array<i64: 2, 1, 1, 1>, scalar_prefetch = 0 : i64, scratch_operands = 3 : i64, tpu.core_type = #tpu.core_type<tc>, window_params = [{transform_indices = @transform_0, window_bounds = array<i64: 1, 8, 96>}, {transform_indices = @transform_1, window_bounds = array<i64: 1, 8, 96>}, {transform_indices = @transform_2, window_bounds = array<i64: 1, 8, 96>}, {transform_indices = @transform_3, window_bounds = array<i64: 1, 8, 32>}]} {
    %c0_i32 = arith.constant 0 : i32
    %0 = arith.cmpi eq, %arg3, %c0_i32 : i32
    %1 = arith.extui %0 : i1 to i32
    %c0_i32_0 = arith.constant 0 : i32
    %2 = arith.cmpi ne, %1, %c0_i32_0 : i32
    scf.if %2 {
      %cst = arith.constant -1.000000e+30 : f32
      %9 = vector.broadcast %cst : f32 to vector<2x8x1xf32>
      %c0 = arith.constant 0 : index
      %c0_4 = arith.constant 0 : index
      %c0_5 = arith.constant 0 : index
      %10 = vector.load %arg8[%c0, %c0_4, %c0_5] : memref<2x8x1xf32, #tpu.memory_space<vmem>>, vector<2x8x1xf32>
      tpu.vector_store %arg8[%c0, %c0_4, %c0_5], %9 {strides = array<i32>} : memref<2x8x1xf32, #tpu.memory_space<vmem>>, vector<2x8x1xf32>,
      %cst_6 = arith.constant 0.000000e+00 : f32
      %11 = vector.broadcast %cst_6 : f32 to vector<2x8x1xf32>
      %c0_7 = arith.constant 0 : index
      %c0_8 = arith.constant 0 : index
      %c0_9 = arith.constant 0 : index
      %12 = vector.load %arg9[%c0_7, %c0_8, %c0_9] : memref<2x8x1xf32, #tpu.memory_space<vmem>>, vector<2x8x1xf32>
      tpu.vector_store %arg9[%c0_7, %c0_8, %c0_9], %11 {strides = array<i32>} : memref<2x8x1xf32, #tpu.memory_space<vmem>>, vector<2x8x1xf32>,
      %cst_10 = arith.constant 0.000000e+00 : f32
      %13 = vector.broadcast %cst_10 : f32 to vector<2x8x16xf32>
      %c0_11 = arith.constant 0 : index
      %c0_12 = arith.constant 0 : index
      %c0_13 = arith.constant 0 : index
      %14 = vector.load %arg10[%c0_11, %c0_12, %c0_13] : memref<2x8x16xf32, #tpu.memory_space<vmem>>, vector<2x8x16xf32>
      tpu.vector_store %arg10[%c0_11, %c0_12, %c0_13], %13 {strides = array<i32>} : memref<2x8x16xf32, #tpu.memory_space<vmem>>, vector<2x8x16xf32>,
    } else {
    }
    %3 = arith.cmpi sle, %arg3, %arg2 : i32
    %4 = arith.extui %3 : i1 to i32
    %c0_i32_1 = arith.constant 0 : i32
    %5 = arith.cmpi ne, %4, %c0_i32_1 : i32
    scf.if %5 {
      %c8_i32 = arith.constant 8 : i32
      %9 = arith.muli %arg2, %c8_i32 : i32
      %10 = tpu.iota {dimensions = array<i32: 0>} : vector<8x8xi32>
      %11 = vector.broadcast %9 : i32 to vector<8x8xi32>
      %12 = arith.addi %11, %10 : vector<8x8xi32>
      %c8_i32_4 = arith.constant 8 : i32
      %13 = arith.muli %arg3, %c8_i32_4 : i32
      %14 = tpu.iota {dimensions = array<i32: 1>} : vector<8x8xi32>
      %15 = vector.broadcast %13 : i32 to vector<8x8xi32>
      %16 = arith.addi %15, %14 : vector<8x8xi32>
      %17 = arith.cmpi sle, %16, %12 : vector<8x8xi32>
      %c0 = arith.constant 0 : index
      %c0_5 = arith.constant 0 : index
      %c0_6 = arith.constant 0 : index
      %18 = vector.load %arg4[%c0, %c0_5, %c0_6] : memref<1x8x96xbf16, #tpu.memory_space<vmem>>, vector<1x8x16xbf16>
      %19 = vector.shape_cast %18 : vector<1x8x16xbf16> to vector<8x16xbf16>
      %20 = arith.extf %19 : vector<8x16xbf16> to vector<8x16xf32>
      %cst = arith.constant 2.500000e-01 : f32
      %21 = vector.broadcast %cst : f32 to vector<8x16xf32>
      %22 = arith.mulf %20, %21 : vector<8x16xf32>
      %23 = arith.truncf %22 : vector<8x16xf32> to vector<8x16xbf16>
      %c0_7 = arith.constant 0 : index
      %c0_8 = arith.constant 0 : index
      %c32 = arith.constant 32 : index
      %24 = vector.load %arg5[%c0_7, %c0_8, %c32] : memref<1x8x96xbf16, #tpu.memory_space<vmem>>, vector<1x8x16xbf16>
      %25 = vector.shape_cast %24 : vector<1x8x16xbf16> to vector<8x16xbf16>
      %c0_9 = arith.constant 0 : index
      %c0_10 = arith.constant 0 : index
      %c64 = arith.constant 64 : index
      %26 = vector.load %arg6[%c0_9, %c0_10, %c64] : memref<1x8x96xbf16, #tpu.memory_space<vmem>>, vector<1x8x16xbf16>
      %27 = vector.shape_cast %26 : vector<1x8x16xbf16> to vector<8x16xbf16>
      %cst_11 = arith.constant dense<0.000000e+00> : vector<8x8xf32>
      %28 = tpu.matmul %23, %25, %cst_11 {dimension_numbers = #tpu.dot_dimension_numbers<[1], [1], [0], [0], [0, 0, 1, 0], [], []>} : vector<8x16xbf16>, vector<8x16xbf16>, vector<8x8xf32> -> vector<8x8xf32>
      %cst_12 = arith.constant -1.000000e+30 : f32
      %29 = vector.broadcast %cst_12 : f32 to vector<8x8xf32>
      %30 = arith.select %17, %28, %29 : vector<8x8xi1>, vector<8x8xf32>
      %c0_13 = arith.constant 0 : index
      %c0_14 = arith.constant 0 : index
      %c0_15 = arith.constant 0 : index
      %31 = vector.load %arg8[%c0_13, %c0_14, %c0_15] : memref<2x8x1xf32, #tpu.memory_space<vmem>>, vector<1x8x1xf32>
      %32 = vector.shape_cast %31 : vector<1x8x1xf32> to vector<8x1xf32>
      %cst_16 = arith.constant dense<0xFF800000> : vector<8xf32>
      %33 = vector.multi_reduction <maximumf>, %30, %cst_16 [1] : vector<8x8xf32> to vector<8xf32>
      %34 = vector.shape_cast %33 : vector<8xf32> to vector<8x1xf32>
      %35 = arith.maximumf %32, %34 : vector<8x1xf32>
      %36 = arith.subf %32, %35 : vector<8x1xf32>
      %37 = math.exp %36 : vector<8x1xf32>
      %38 = vector.broadcast %35 : vector<8x1xf32> to vector<8x8xf32>
      %39 = arith.subf %30, %38 : vector<8x8xf32>
      %40 = math.exp %39 : vector<8x8xf32>
      %c0_17 = arith.constant 0 : index
      %c0_18 = arith.constant 0 : index
      %c0_19 = arith.constant 0 : index
      %41 = vector.load %arg9[%c0_17, %c0_18, %c0_19] : memref<2x8x1xf32, #tpu.memory_space<vmem>>, vector<1x8x1xf32>
      %42 = vector.shape_cast %41 : vector<1x8x1xf32> to vector<8x1xf32>
      %43 = arith.mulf %37, %42 : vector<8x1xf32>
      %cst_20 = arith.constant dense<0.000000e+00> : vector<8xf32>
      %44 = vector.multi_reduction <add>, %40, %cst_20 [1] : vector<8x8xf32> to vector<8xf32>
      %45 = vector.shape_cast %44 : vector<8xf32> to vector<8x1xf32>
      %46 = arith.addf %43, %45 : vector<8x1xf32>
      %c0_21 = arith.constant 0 : index
      %c0_22 = arith.constant 0 : index
      %c0_23 = arith.constant 0 : index
      %47 = vector.load %arg9[%c0_21, %c0_22, %c0_23] : memref<2x8x1xf32, #tpu.memory_space<vmem>>, vector<1x8x1xf32>
      %48 = vector.shape_cast %47 : vector<1x8x1xf32> to vector<8x1xf32>
      %49 = vector.shape_cast %46 : vector<8x1xf32> to vector<1x8x1xf32>
      tpu.vector_store %arg9[%c0_21, %c0_22, %c0_23], %49 {strides = array<i32>} : memref<2x8x1xf32, #tpu.memory_space<vmem>>, vector<1x8x1xf32>,
      %c0_24 = arith.constant 0 : index
      %c0_25 = arith.constant 0 : index
      %c0_26 = arith.constant 0 : index
      %50 = vector.load %arg10[%c0_24, %c0_25, %c0_26] : memref<2x8x16xf32, #tpu.memory_space<vmem>>, vector<1x8x16xf32>
      %51 = vector.shape_cast %50 : vector<1x8x16xf32> to vector<8x16xf32>
      %52 = vector.broadcast %37 : vector<8x1xf32> to vector<8x16xf32>
      %53 = arith.mulf %52, %51 : vector<8x16xf32>
      %54 = arith.truncf %40 : vector<8x8xf32> to vector<8x8xbf16>
      %cst_27 = arith.constant dense<0.000000e+00> : vector<8x16xf32>
      %55 = tpu.matmul %54, %27, %cst_27 {dimension_numbers = #tpu.dot_dimension_numbers<[1], [0], [0], [1], [0, 0, 1, 1], [], []>} : vector<8x8xbf16>, vector<8x16xbf16>, vector<8x16xf32> -> vector<8x16xf32>
      %56 = arith.addf %53, %55 : vector<8x16xf32>
      %c0_28 = arith.constant 0 : index
      %c0_29 = arith.constant 0 : index
      %c0_30 = arith.constant 0 : index
      %57 = vector.load %arg10[%c0_28, %c0_29, %c0_30] : memref<2x8x16xf32, #tpu.memory_space<vmem>>, vector<1x8x16xf32>
      %58 = vector.shape_cast %57 : vector<1x8x16xf32> to vector<8x16xf32>
      %59 = vector.shape_cast %56 : vector<8x16xf32> to vector<1x8x16xf32>
      tpu.vector_store %arg10[%c0_28, %c0_29, %c0_30], %59 {strides = array<i32>} : memref<2x8x16xf32, #tpu.memory_space<vmem>>, vector<1x8x16xf32>,
      %c0_31 = arith.constant 0 : index
      %c0_32 = arith.constant 0 : index
      %c0_33 = arith.constant 0 : index
      %60 = vector.load %arg8[%c0_31, %c0_32, %c0_33] : memref<2x8x1xf32, #tpu.memory_space<vmem>>, vector<1x8x1xf32>
      %61 = vector.shape_cast %60 : vector<1x8x1xf32> to vector<8x1xf32>
      %62 = vector.shape_cast %35 : vector<8x1xf32> to vector<1x8x1xf32>
      tpu.vector_store %arg8[%c0_31, %c0_32, %c0_33], %62 {strides = array<i32>} : memref<2x8x1xf32, #tpu.memory_space<vmem>>, vector<1x8x1xf32>,
      %c0_34 = arith.constant 0 : index
      %c0_35 = arith.constant 0 : index
      %c16 = arith.constant 16 : index
      %63 = vector.load %arg4[%c0_34, %c0_35, %c16] : memref<1x8x96xbf16, #tpu.memory_space<vmem>>, vector<1x8x16xbf16>
      %64 = vector.shape_cast %63 : vector<1x8x16xbf16> to vector<8x16xbf16>
      %65 = arith.extf %64 : vector<8x16xbf16> to vector<8x16xf32>
      %cst_36 = arith.constant 2.500000e-01 : f32
      %66 = vector.broadcast %cst_36 : f32 to vector<8x16xf32>
      %67 = arith.mulf %65, %66 : vector<8x16xf32>
      %68 = arith.truncf %67 : vector<8x16xf32> to vector<8x16xbf16>
      %c0_37 = arith.constant 0 : index
      %c0_38 = arith.constant 0 : index
      %c48 = arith.constant 48 : index
      %69 = vector.load %arg5[%c0_37, %c0_38, %c48] : memref<1x8x96xbf16, #tpu.memory_space<vmem>>, vector<1x8x16xbf16>
      %70 = vector.shape_cast %69 : vector<1x8x16xbf16> to vector<8x16xbf16>
      %c0_39 = arith.constant 0 : index
      %c0_40 = arith.constant 0 : index
      %c80 = arith.constant 80 : index
      %71 = vector.load %arg6[%c0_39, %c0_40, %c80] : memref<1x8x96xbf16, #tpu.memory_space<vmem>>, vector<1x8x16xbf16>
      %72 = vector.shape_cast %71 : vector<1x8x16xbf16> to vector<8x16xbf16>
      %cst_41 = arith.constant dense<0.000000e+00> : vector<8x8xf32>
      %73 = tpu.matmul %68, %70, %cst_41 {dimension_numbers = #tpu.dot_dimension_numbers<[1], [1], [0], [0], [0, 0, 1, 0], [], []>} : vector<8x16xbf16>, vector<8x16xbf16>, vector<8x8xf32> -> vector<8x8xf32>
      %cst_42 = arith.constant -1.000000e+30 : f32
      %74 = vector.broadcast %cst_42 : f32 to vector<8x8xf32>
      %75 = arith.select %17, %73, %74 : vector<8x8xi1>, vector<8x8xf32>
      %c1 = arith.constant 1 : index
      %c0_43 = arith.constant 0 : index
      %c0_44 = arith.constant 0 : index
      %76 = vector.load %arg8[%c1, %c0_43, %c0_44] : memref<2x8x1xf32, #tpu.memory_space<vmem>>, vector<1x8x1xf32>
      %77 = vector.shape_cast %76 : vector<1x8x1xf32> to vector<8x1xf32>
      %cst_45 = arith.constant dense<0xFF800000> : vector<8xf32>
      %78 = vector.multi_reduction <maximumf>, %75, %cst_45 [1] : vector<8x8xf32> to vector<8xf32>
      %79 = vector.shape_cast %78 : vector<8xf32> to vector<8x1xf32>
      %80 = arith.maximumf %77, %79 : vector<8x1xf32>
      %81 = arith.subf %77, %80 : vector<8x1xf32>
      %82 = math.exp %81 : vector<8x1xf32>
      %83 = vector.broadcast %80 : vector<8x1xf32> to vector<8x8xf32>
      %84 = arith.subf %75, %83 : vector<8x8xf32>
      %85 = math.exp %84 : vector<8x8xf32>
      %c1_46 = arith.constant 1 : index
      %c0_47 = arith.constant 0 : index
      %c0_48 = arith.constant 0 : index
      %86 = vector.load %arg9[%c1_46, %c0_47, %c0_48] : memref<2x8x1xf32, #tpu.memory_space<vmem>>, vector<1x8x1xf32>
      %87 = vector.shape_cast %86 : vector<1x8x1xf32> to vector<8x1xf32>
      %88 = arith.mulf %82, %87 : vector<8x1xf32>
      %cst_49 = arith.constant dense<0.000000e+00> : vector<8xf32>
      %89 = vector.multi_reduction <add>, %85, %cst_49 [1] : vector<8x8xf32> to vector<8xf32>
      %90 = vector.shape_cast %89 : vector<8xf32> to vector<8x1xf32>
      %91 = arith.addf %88, %90 : vector<8x1xf32>
      %c1_50 = arith.constant 1 : index
      %c0_51 = arith.constant 0 : index
      %c0_52 = arith.constant 0 : index
      %92 = vector.load %arg9[%c1_50, %c0_51, %c0_52] : memref<2x8x1xf32, #tpu.memory_space<vmem>>, vector<1x8x1xf32>
      %93 = vector.shape_cast %92 : vector<1x8x1xf32> to vector<8x1xf32>
      %94 = vector.shape_cast %91 : vector<8x1xf32> to vector<1x8x1xf32>
      tpu.vector_store %arg9[%c1_50, %c0_51, %c0_52], %94 {strides = array<i32>} : memref<2x8x1xf32, #tpu.memory_space<vmem>>, vector<1x8x1xf32>,
      %c1_53 = arith.constant 1 : index
      %c0_54 = arith.constant 0 : index
      %c0_55 = arith.constant 0 : index
      %95 = vector.load %arg10[%c1_53, %c0_54, %c0_55] : memref<2x8x16xf32, #tpu.memory_space<vmem>>, vector<1x8x16xf32>
      %96 = vector.shape_cast %95 : vector<1x8x16xf32> to vector<8x16xf32>
      %97 = vector.broadcast %82 : vector<8x1xf32> to vector<8x16xf32>
      %98 = arith.mulf %97, %96 : vector<8x16xf32>
      %99 = arith.truncf %85 : vector<8x8xf32> to vector<8x8xbf16>
      %cst_56 = arith.constant dense<0.000000e+00> : vector<8x16xf32>
      %100 = tpu.matmul %99, %72, %cst_56 {dimension_numbers = #tpu.dot_dimension_numbers<[1], [0], [0], [1], [0, 0, 1, 1], [], []>} : vector<8x8xbf16>, vector<8x16xbf16>, vector<8x16xf32> -> vector<8x16xf32>
      %101 = arith.addf %98, %100 : vector<8x16xf32>
      %c1_57 = arith.constant 1 : index
      %c0_58 = arith.constant 0 : index
      %c0_59 = arith.constant 0 : index
      %102 = vector.load %arg10[%c1_57, %c0_58, %c0_59] : memref<2x8x16xf32, #tpu.memory_space<vmem>>, vector<1x8x16xf32>
      %103 = vector.shape_cast %102 : vector<1x8x16xf32> to vector<8x16xf32>
      %104 = vector.shape_cast %101 : vector<8x16xf32> to vector<1x8x16xf32>
      tpu.vector_store %arg10[%c1_57, %c0_58, %c0_59], %104 {strides = array<i32>} : memref<2x8x16xf32, #tpu.memory_space<vmem>>, vector<1x8x16xf32>,
      %c1_60 = arith.constant 1 : index
      %c0_61 = arith.constant 0 : index
      %c0_62 = arith.constant 0 : index
      %105 = vector.load %arg8[%c1_60, %c0_61, %c0_62] : memref<2x8x1xf32, #tpu.memory_space<vmem>>, vector<1x8x1xf32>
      %106 = vector.shape_cast %105 : vector<1x8x1xf32> to vector<8x1xf32>
      %107 = vector.shape_cast %80 : vector<8x1xf32> to vector<1x8x1xf32>
      tpu.vector_store %arg8[%c1_60, %c0_61, %c0_62], %107 {strides = array<i32>} : memref<2x8x1xf32, #tpu.memory_space<vmem>>, vector<1x8x1xf32>,
    } else {
    }
    %c0_i32_2 = arith.constant 0 : i32
    %6 = arith.cmpi eq, %arg3, %c0_i32_2 : i32
    %7 = arith.extui %6 : i1 to i32
    %c0_i32_3 = arith.constant 0 : i32
    %8 = arith.cmpi ne, %7, %c0_i32_3 : i32
    scf.if %8 {
      %c0 = arith.constant 0 : index
      %c0_4 = arith.constant 0 : index
      %c0_5 = arith.constant 0 : index
      %9 = vector.load %arg9[%c0, %c0_4, %c0_5] : memref<2x8x1xf32, #tpu.memory_space<vmem>>, vector<1x8x1xf32>
      %10 = vector.shape_cast %9 : vector<1x8x1xf32> to vector<8x1xf32>
      %11 = tpu.reciprocal %10 {approx = true} : vector<8x1xf32> -> vector<8x1xf32>
      %c0_6 = arith.constant 0 : index
      %c0_7 = arith.constant 0 : index
      %c0_8 = arith.constant 0 : index
      %12 = vector.load %arg10[%c0_6, %c0_7, %c0_8] : memref<2x8x16xf32, #tpu.memory_space<vmem>>, vector<1x8x16xf32>
      %13 = vector.shape_cast %12 : vector<1x8x16xf32> to vector<8x16xf32>
      %14 = vector.broadcast %11 : vector<8x1xf32> to vector<8x16xf32>
      %15 = arith.mulf %13, %14 : vector<8x16xf32>
      %16 = arith.truncf %15 : vector<8x16xf32> to vector<8x16xbf16>
      %c0_9 = arith.constant 0 : index
      %c0_10 = arith.constant 0 : index
      %c0_11 = arith.constant 0 : index
      %17 = vector.load %arg7[%c0_9, %c0_10, %c0_11] : memref<1x8x32xbf16, #tpu.memory_space<vmem>>, vector<1x8x16xbf16>
      %18 = vector.shape_cast %17 : vector<1x8x16xbf16> to vector<8x16xbf16>
      %19 = vector.shape_cast %16 : vector<8x16xbf16> to vector<1x8x16xbf16>
      tpu.vector_store %arg7[%c0_9, %c0_10, %c0_11], %19 {strides = array<i32>} : memref<1x8x32xbf16, #tpu.memory_space<vmem>>, vector<1x8x16xbf16>,
      %c1 = arith.constant 1 : index
      %c0_12 = arith.constant 0 : index
      %c0_13 = arith.constant 0 : index
      %20 = vector.load %arg9[%c1, %c0_12, %c0_13] : memref<2x8x1xf32, #tpu.memory_space<vmem>>, vector<1x8x1xf32>
      %21 = vector.shape_cast %20 : vector<1x8x1xf32> to vector<8x1xf32>
      %22 = tpu.reciprocal %21 {approx = true} : vector<8x1xf32> -> vector<8x1xf32>
      %c1_14 = arith.constant 1 : index
      %c0_15 = arith.constant 0 : index
      %c0_16 = arith.constant 0 : index
      %23 = vector.load %arg10[%c1_14, %c0_15, %c0_16] : memref<2x8x16xf32, #tpu.memory_space<vmem>>, vector<1x8x16xf32>
      %24 = vector.shape_cast %23 : vector<1x8x16xf32> to vector<8x16xf32>
      %25 = vector.broadcast %22 : vector<8x1xf32> to vector<8x16xf32>
      %26 = arith.mulf %24, %25 : vector<8x16xf32>
      %27 = arith.truncf %26 : vector<8x16xf32> to vector<8x16xbf16>
      %c0_17 = arith.constant 0 : index
      %c0_18 = arith.constant 0 : index
      %c16 = arith.constant 16 : index
      %28 = vector.load %arg7[%c0_17, %c0_18, %c16] : memref<1x8x32xbf16, #tpu.memory_space<vmem>>, vector<1x8x16xbf16>
      %29 = vector.shape_cast %28 : vector<1x8x16xbf16> to vector<8x16xbf16>
      %30 = vector.shape_cast %27 : vector<8x16xbf16> to vector<1x8x16xbf16>
      tpu.vector_store %arg7[%c0_17, %c0_18, %c16], %30 {strides = array<i32>} : memref<1x8x32xbf16, #tpu.memory_space<vmem>>, vector<1x8x16xbf16>,
    } else {
    }
    return
  }
  func.func @transform_0(%arg0: i32, %arg1: i32, %arg2: i32, %arg3: i32) -> (i32, i32, i32) {
    %c0_i32 = arith.constant 0 : i32
    %c0_i32_0 = arith.constant 0 : i32
    return %arg0, %arg2, %c0_i32 : i32, i32, i32
  }
  func.func @transform_1(%arg0: i32, %arg1: i32, %arg2: i32, %arg3: i32) -> (i32, i32, i32) {
    %c0_i32 = arith.constant 0 : i32
    %c0_i32_0 = arith.constant 0 : i32
    return %arg0, %arg3, %c0_i32 : i32, i32, i32
  }
  func.func @transform_2(%arg0: i32, %arg1: i32, %arg2: i32, %arg3: i32) -> (i32, i32, i32) {
    %c0_i32 = arith.constant 0 : i32
    %c0_i32_0 = arith.constant 0 : i32
    return %arg0, %arg3, %c0_i32 : i32, i32, i32
  }
  func.func @transform_3(%arg0: i32, %arg1: i32, %arg2: i32, %arg3: i32) -> (i32, i32, i32) {
    %c0_i32 = arith.constant 0 : i32
    %c0_i32_0 = arith.constant 0 : i32
    return %arg0, %arg2, %c0_i32 : i32, i32, i32
  }
}

module attributes {stable_mosaic.version = 11 : i64} {
  func.func @_matmul_residual_kernel(%arg0: i32, %arg1: i32, %arg2: i32, %arg3: memref<16x128xbf16, #tpu.memory_space<vmem>>, %arg4: memref<128x32xbf16, #tpu.memory_space<vmem>>, %arg5: memref<1x32xf32, #tpu.memory_space<vmem>>, %arg6: memref<16x32xbf16, #tpu.memory_space<vmem>>, %arg7: memref<16x32xbf16, #tpu.memory_space<vmem>>, %arg8: memref<16x32xf32, #tpu.memory_space<vmem>>) attributes {dimension_semantics = [#tpu.dimension_semantics<parallel>, #tpu.dimension_semantics<parallel>, #tpu.dimension_semantics<arbitrary>], iteration_bounds = array<i64: 1, 1, 1>, scalar_prefetch = 0 : i64, scratch_operands = 1 : i64, tpu.core_type = #tpu.core_type<tc>, window_params = [{transform_indices = @transform_0, window_bounds = array<i64: 16, 128>}, {transform_indices = @transform_1, window_bounds = array<i64: 128, 32>}, {transform_indices = @transform_2, window_bounds = array<i64: 1, 32>}, {transform_indices = @transform_3, window_bounds = array<i64: 16, 32>}, {transform_indices = @transform_4, window_bounds = array<i64: 16, 32>}]} {
    %c0_i32 = arith.constant 0 : i32
    %0 = arith.cmpi eq, %arg2, %c0_i32 : i32
    %1 = arith.extui %0 : i1 to i32
    %c0_i32_0 = arith.constant 0 : i32
    %2 = arith.cmpi ne, %1, %c0_i32_0 : i32
    scf.if %2 {
      %cst_10 = arith.constant 0.000000e+00 : f32
      %12 = vector.broadcast %cst_10 : f32 to vector<16x32xf32>
      %c0_11 = arith.constant 0 : index
      %c0_12 = arith.constant 0 : index
      %13 = vector.load %arg8[%c0_11, %c0_12] : memref<16x32xf32, #tpu.memory_space<vmem>>, vector<16x32xf32>
      tpu.vector_store %arg8[%c0_11, %c0_12], %12 {strides = array<i32>} : memref<16x32xf32, #tpu.memory_space<vmem>>, vector<16x32xf32>,
    } else {
    }
    %c0 = arith.constant 0 : index
    %c0_1 = arith.constant 0 : index
    %3 = vector.load %arg8[%c0, %c0_1] : memref<16x32xf32, #tpu.memory_space<vmem>>, vector<16x32xf32>
    %c0_2 = arith.constant 0 : index
    %c0_3 = arith.constant 0 : index
    %4 = vector.load %arg3[%c0_2, %c0_3] : memref<16x128xbf16, #tpu.memory_space<vmem>>, vector<16x128xbf16>
    %c0_4 = arith.constant 0 : index
    %c0_5 = arith.constant 0 : index
    %5 = vector.load %arg4[%c0_4, %c0_5] : memref<128x32xbf16, #tpu.memory_space<vmem>>, vector<128x32xbf16>
    %cst = arith.constant dense<0.000000e+00> : vector<16x32xf32>
    %6 = tpu.matmul %4, %5, %cst {dimension_numbers = #tpu.dot_dimension_numbers<[1], [0], [0], [1], [0, 0, 1, 1], [], []>} : vector<16x128xbf16>, vector<128x32xbf16>, vector<16x32xf32> -> vector<16x32xf32>
    %7 = arith.addf %3, %6 : vector<16x32xf32>
    %c0_6 = arith.constant 0 : index
    %c0_7 = arith.constant 0 : index
    %8 = vector.load %arg8[%c0_6, %c0_7] : memref<16x32xf32, #tpu.memory_space<vmem>>, vector<16x32xf32>
    tpu.vector_store %arg8[%c0_6, %c0_7], %7 {strides = array<i32>} : memref<16x32xf32, #tpu.memory_space<vmem>>, vector<16x32xf32>,
    %c0_i32_8 = arith.constant 0 : i32
    %9 = arith.cmpi eq, %arg2, %c0_i32_8 : i32
    %10 = arith.extui %9 : i1 to i32
    %c0_i32_9 = arith.constant 0 : i32
    %11 = arith.cmpi ne, %10, %c0_i32_9 : i32
    scf.if %11 {
      %c0_10 = arith.constant 0 : index
      %c0_11 = arith.constant 0 : index
      %12 = vector.load %arg8[%c0_10, %c0_11] : memref<16x32xf32, #tpu.memory_space<vmem>>, vector<16x32xf32>
      %c0_12 = arith.constant 0 : index
      %c0_13 = arith.constant 0 : index
      %13 = vector.load %arg5[%c0_12, %c0_13] : memref<1x32xf32, #tpu.memory_space<vmem>>, vector<1x32xf32>
      %14 = vector.broadcast %13 : vector<1x32xf32> to vector<16x32xf32>
      %15 = arith.addf %12, %14 : vector<16x32xf32>
      %c0_14 = arith.constant 0 : index
      %c0_15 = arith.constant 0 : index
      %16 = vector.load %arg6[%c0_14, %c0_15] : memref<16x32xbf16, #tpu.memory_space<vmem>>, vector<16x32xbf16>
      %17 = arith.extf %16 : vector<16x32xbf16> to vector<16x32xf32>
      %18 = arith.addf %15, %17 : vector<16x32xf32>
      %19 = arith.truncf %18 : vector<16x32xf32> to vector<16x32xbf16>
      %c0_16 = arith.constant 0 : index
      %c0_17 = arith.constant 0 : index
      %20 = vector.load %arg7[%c0_16, %c0_17] : memref<16x32xbf16, #tpu.memory_space<vmem>>, vector<16x32xbf16>
      tpu.vector_store %arg7[%c0_16, %c0_17], %19 {strides = array<i32>} : memref<16x32xbf16, #tpu.memory_space<vmem>>, vector<16x32xbf16>,
    } else {
    }
    return
  }
  func.func @transform_0(%arg0: i32, %arg1: i32, %arg2: i32) -> (i32, i32) {
    %c0_i32 = arith.constant 0 : i32
    return %arg0, %arg2 : i32, i32
  }
  func.func @transform_1(%arg0: i32, %arg1: i32, %arg2: i32) -> (i32, i32) {
    %c0_i32 = arith.constant 0 : i32
    return %arg2, %arg1 : i32, i32
  }
  func.func @transform_2(%arg0: i32, %arg1: i32, %arg2: i32) -> (i32, i32) {
    %c0_i32 = arith.constant 0 : i32
    %c0_i32_0 = arith.constant 0 : i32
    return %c0_i32, %arg1 : i32, i32
  }
  func.func @transform_3(%arg0: i32, %arg1: i32, %arg2: i32) -> (i32, i32) {
    %c0_i32 = arith.constant 0 : i32
    return %arg0, %arg1 : i32, i32
  }
  func.func @transform_4(%arg0: i32, %arg1: i32, %arg2: i32) -> (i32, i32) {
    %c0_i32 = arith.constant 0 : i32
    return %arg0, %arg1 : i32, i32
  }
}

module attributes {stable_mosaic.version = 11 : i64} {
  func.func @_ln_lmhead_kernel(%arg0: i32, %arg1: i32, %arg2: memref<16x32xbf16, #tpu.memory_space<vmem>>, %arg3: memref<1x32xf32, #tpu.memory_space<vmem>>, %arg4: memref<1x32xf32, #tpu.memory_space<vmem>>, %arg5: memref<128x32xbf16, #tpu.memory_space<vmem>>, %arg6: memref<16x128xf32, #tpu.memory_space<vmem>>) attributes {dimension_semantics = [#tpu.dimension_semantics<parallel>, #tpu.dimension_semantics<parallel>], iteration_bounds = array<i64: 1, 1>, scalar_prefetch = 0 : i64, scratch_operands = 0 : i64, tpu.core_type = #tpu.core_type<tc>, window_params = [{transform_indices = @transform_0, window_bounds = array<i64: 16, 32>}, {pipeline_mode = #tpu.pipeline_mode<synchronous>, transform_indices = @transform_1, window_bounds = array<i64: 1, 32>}, {pipeline_mode = #tpu.pipeline_mode<synchronous>, transform_indices = @transform_2, window_bounds = array<i64: 1, 32>}, {transform_indices = @transform_3, window_bounds = array<i64: 128, 32>}, {transform_indices = @transform_4, window_bounds = array<i64: 16, 128>}]} {
    %c0 = arith.constant 0 : index
    %c0_0 = arith.constant 0 : index
    %0 = vector.load %arg2[%c0, %c0_0] : memref<16x32xbf16, #tpu.memory_space<vmem>>, vector<16x32xbf16>
    %1 = arith.extf %0 : vector<16x32xbf16> to vector<16x32xf32>
    %cst = arith.constant dense<0.000000e+00> : vector<16xf32>
    %2 = vector.multi_reduction <add>, %1, %cst [1] : vector<16x32xf32> to vector<16xf32>
    %3 = vector.shape_cast %2 : vector<16xf32> to vector<16x1xf32>
    %cst_1 = arith.constant 3.200000e+01 : f32
    %4 = vector.broadcast %cst_1 : f32 to vector<16x1xf32>
    %5 = arith.divf %3, %4 : vector<16x1xf32>
    %6 = vector.broadcast %5 : vector<16x1xf32> to vector<16x32xf32>
    %7 = arith.subf %1, %6 : vector<16x32xf32>
    %8 = arith.mulf %7, %7 : vector<16x32xf32>
    %cst_2 = arith.constant dense<0.000000e+00> : vector<16xf32>
    %9 = vector.multi_reduction <add>, %8, %cst_2 [1] : vector<16x32xf32> to vector<16xf32>
    %10 = vector.shape_cast %9 : vector<16xf32> to vector<16x1xf32>
    %cst_3 = arith.constant 3.200000e+01 : f32
    %11 = vector.broadcast %cst_3 : f32 to vector<16x1xf32>
    %12 = arith.divf %10, %11 : vector<16x1xf32>
    %cst_4 = arith.constant 9.99999974E-6 : f32
    %13 = vector.broadcast %cst_4 : f32 to vector<16x1xf32>
    %14 = arith.addf %12, %13 : vector<16x1xf32>
    %15 = math.rsqrt %14 : vector<16x1xf32>
    %16 = vector.broadcast %15 : vector<16x1xf32> to vector<16x32xf32>
    %17 = arith.mulf %7, %16 : vector<16x32xf32>
    %c0_5 = arith.constant 0 : index
    %c0_6 = arith.constant 0 : index
    %18 = vector.load %arg3[%c0_5, %c0_6] : memref<1x32xf32, #tpu.memory_space<vmem>>, vector<1x32xf32>
    %19 = vector.broadcast %18 : vector<1x32xf32> to vector<16x32xf32>
    %20 = arith.mulf %17, %19 : vector<16x32xf32>
    %c0_7 = arith.constant 0 : index
    %c0_8 = arith.constant 0 : index
    %21 = vector.load %arg4[%c0_7, %c0_8] : memref<1x32xf32, #tpu.memory_space<vmem>>, vector<1x32xf32>
    %22 = vector.broadcast %21 : vector<1x32xf32> to vector<16x32xf32>
    %23 = arith.addf %20, %22 : vector<16x32xf32>
    %24 = arith.truncf %23 : vector<16x32xf32> to vector<16x32xbf16>
    %c0_9 = arith.constant 0 : index
    %c0_10 = arith.constant 0 : index
    %25 = vector.load %arg5[%c0_9, %c0_10] : memref<128x32xbf16, #tpu.memory_space<vmem>>, vector<128x32xbf16>
    %cst_11 = arith.constant dense<0.000000e+00> : vector<16x128xf32>
    %26 = tpu.matmul %24, %25, %cst_11 {dimension_numbers = #tpu.dot_dimension_numbers<[1], [1], [0], [0], [0, 0, 1, 0], [], []>} : vector<16x32xbf16>, vector<128x32xbf16>, vector<16x128xf32> -> vector<16x128xf32>
    %c0_12 = arith.constant 0 : index
    %c0_13 = arith.constant 0 : index
    %27 = vector.load %arg6[%c0_12, %c0_13] : memref<16x128xf32, #tpu.memory_space<vmem>>, vector<16x128xf32>
    tpu.vector_store %arg6[%c0_12, %c0_13], %26 {strides = array<i32>} : memref<16x128xf32, #tpu.memory_space<vmem>>, vector<16x128xf32>,
    return
  }
  func.func @transform_0(%arg0: i32, %arg1: i32) -> (i32, i32) {
    %c0_i32 = arith.constant 0 : i32
    %c0_i32_0 = arith.constant 0 : i32
    return %arg0, %c0_i32 : i32, i32
  }
  func.func @transform_1(%arg0: i32, %arg1: i32) -> (i32, i32) {
    %c0_i32 = arith.constant 0 : i32
    %c0_i32_0 = arith.constant 0 : i32
    %c0_i32_1 = arith.constant 0 : i32
    return %c0_i32, %c0_i32_0 : i32, i32
  }
  func.func @transform_2(%arg0: i32, %arg1: i32) -> (i32, i32) {
    %c0_i32 = arith.constant 0 : i32
    %c0_i32_0 = arith.constant 0 : i32
    %c0_i32_1 = arith.constant 0 : i32
    return %c0_i32, %c0_i32_0 : i32, i32
  }
  func.func @transform_3(%arg0: i32, %arg1: i32) -> (i32, i32) {
    %c0_i32 = arith.constant 0 : i32
    %c0_i32_0 = arith.constant 0 : i32
    return %arg1, %c0_i32 : i32, i32
  }
  func.func @transform_4(%arg0: i32, %arg1: i32) -> (i32, i32) {
    %c0_i32 = arith.constant 0 : i32
    return %arg0, %arg1 : i32, i32
  }
}

</mosaic_0001>

<bundles_post_ra>
// kernel: gpt_forward.11
= control target key start
LH: loop header
LB: loop body
LE: loop exit
PB: predicated region body
PF: predicated region fallthrough
CT: control target
= control target key end

     0   :  { %vm25_vm0 = vcmask 261120   ;;  %v187_v16 = vmov 0.0   ;;  %vm188_vm1 = vmmov 0   ;;  %vm147_vm2 = vcmask 781312   ;;  %s248_s0 = inlined_call_operand.vmem [shape: bf16[16,32], index: 0, kind: input, shape index: {}]   ;;  %s249_s3 = inlined_call_operand.vmem [shape: bf16[32,96], index: 3, kind: input, shape index: {}]   ;;  %s250_s1 = inlined_call_operand.vmem [shape: f32[1,32], index: 1, kind: input, shape index: {}]   ;;  %s251_s2 = inlined_call_operand.vmem [shape: f32[1,32], index: 2, kind: input, shape index: {}]   ;;  %s252_s4 = inlined_call_operand.vmem [shape: f32[1,96], index: 4, kind: input, shape index: {}]   ;;  %s253_s5 = inlined_call_operand.vmem [shape: bf16[16,96], index: 5, kind: output, shape index: {}]  }
   0x1   :  { %v165_v0 = vld [vmem:[%s248_s0] sm:$0xff]   ;;  %171 = vmatprep.subr.bf16.mxu0 %v187_v16  ;;  %v182_v17 = vld [vmem:[%s249_s3 + $0x8] sm:$0xff]   ;;  %175 = vmatprep.mubr.msk.bf16.mxu0 %vm188_vm1, %v187_v16 }
   0x2   :  { %v166_v1 = vunpack.c.l.bf16 %v165_v0  ;;  %v167_v2 = vunpack.c.h.bf16 %v165_v0  ;;  %v181_v15 = vld [vmem:[%s249_s3] sm:$0xff]  }
   0x3   :  { %172 = vmatpush3.bf16.msra.mxu0 %v181_v15  ;;  %v154_v26 = vld [vmem:[%s250_s1] ss:$0 sm:$0xff] }
   0x4   :  { %v26_v3 = vsel %vm25_vm0, %v166_v1, 0.0  ;;  %v29_v4 = vsel %vm25_vm0, %v167_v2, 0.0  ;;  %173 = vmatprep.subr.bf16.mxu0 %v187_v16  ;;  %v155_v30 = vld [vmem:[%s251_s2] ss:$0 sm:$0xff] }
   0x5   :  { %27 = vadd.xlane.f32.xlu0 %v26_v3  ;;  %v156_v35 = vld [vmem:[%s252_s4] ss:$0 sm:$0xff] }
   0x7   :  { %174 = vmatpush3.bf16.msra.mxu0 %v182_v17 }
   0x9   :  { %30 = vadd.xlane.f32.xlu0 %v29_v4 }
  0x92   :  { %v28_v5 = vpop.xlane.xlu0 %27 }
  0x93   :  { %v33_v6 = vmul.f32 0.03125, %v28_v5 }
  0x95   :  { %v35_v7 = vsub.f32 %v166_v1, %v33_v6 }
  0x96   :  { %v31_v8 = vpop.xlane.xlu0 %30 }
  0x97   :  { %v34_v9 = vmul.f32 0.03125, %v31_v8  ;;  %v37_v10 = vmul.f32 %v35_v7, %v35_v7 }
  0x99   :  { %v36_v11 = vsub.f32 %v167_v2, %v34_v9  ;;  %v39_v12 = vsel %vm25_vm0, %v37_v10, 0.0 }
  0x9a   :  { %40 = vadd.xlane.f32.xlu1 %v39_v12 }
  0x9b   :  { %v38_v13 = vmul.f32 %v36_v11, %v36_v11 }
  0x9d   :  { %v42_v14 = vsel %vm25_vm0, %v38_v13, 0.0 }
  0x9e   :  { %43 = vadd.xlane.f32.xlu1 %v42_v14 }
 0x127   :  { %v41_v18 = vpop.xlane.xlu1 %40 }
 0x128   :  { %v45_v19 = vmul.f32 0.03125, %v41_v18 }
 0x12a   :  { %v47_v20 = vadd.f32 1e-05, %v45_v19 }
 0x12b   :  { %v44_v21 = vpop.xlane.xlu1 %43 }
 0x12c   :  { %183 = vrsqrt.f32 %v47_v20  ;;  %v46_v22 = vmul.f32 0.03125, %v44_v21 }
 0x12e   :  { %v48_v23 = vadd.f32 1e-05, %v46_v22 }
 0x130   :  { %185 = vrsqrt.f32 %v48_v23 }
 0x136   :  { %v184_v24 = vpop.eup %183 }
 0x137   :  { %v51_v25 = vmul.f32 %v184_v24, %v35_v7 }
 0x139   :  { %v60_v29 = vmul.f32 %v154_v26, %v51_v25 }
 0x13a   :  { %v186_v27 = vpop.eup %185 }
 0x13b   :  { %v52_v28 = vmul.f32 %v186_v27, %v36_v11  ;;  %v69_v32 = vadd.f32 %v155_v30, %v60_v29 }
 0x13d   :  { %v61_v31 = vmul.f32 %v154_v26, %v52_v28 }
 0x13f   :  { %v70_v33 = vadd.f32 %v155_v30, %v61_v31 }
 0x141   :  { %v71_v34 = vpack.c.bf16 %v70_v33, %v69_v32 }
 0x143   :  { %176 = vmatmul.mubr.msk.bf16.vlgmr.msra.gmra.mrb[0].mxu0 %vm25_vm0, %v71_v34 }
 0x216   :  { %v132_v36 = vpop.f32.mrb[0].mxu0 }
 0x217   :  { %v133_v37 = vadd.f32 %v156_v35, %v132_v36  ;;  %v177_v38 = vpop.f32.mrb[1].mxu0 }
 0x218   :  { %v135_v39 = vpop.f32.mrb[2].mxu0 }
 0x219   :  { %v162_v40 = vpack.c.bf16 %v133_v37, %v133_v37  ;;  %v136_v41 = vadd.f32 %v156_v35, %v135_v39  ;;  %v178_v42 = vpop.f32.mrb[3].mxu0 }
 0x21b   :  { %148 = vst.msk [vmem:[%s253_s5] sm:$0xf] %vm147_vm2, %v162_v40  ;;  %v163_v43 = vpack.c.bf16 %v136_v41, %v136_v41 }
 0x21d   :  { %149 = vst.msk [vmem:[%s253_s5 + $0x4] sm:$0xf] %vm147_vm2, %v163_v43 }

// kernel: gpt_forward.14
= control target key start
LH: loop header
LB: loop body
LE: loop exit
PB: predicated region body
PF: predicated region fallthrough
CT: control target
= control target key end

     0   :  { %vm25_vm0 = vcmask 261120   ;;  %v213_v16 = vmov 0.0   ;;  %vm214_vm1 = vmmov 0   ;;  %s271_s0 = inlined_call_operand.vmem [shape: bf16[16,32], index: 0, kind: input, shape index: {}]   ;;  %s272_s3 = inlined_call_operand.vmem [shape: bf16[32,128], index: 3, kind: input, shape index: {}]   ;;  %s273_s1 = inlined_call_operand.vmem [shape: f32[1,32], index: 1, kind: input, shape index: {}]   ;;  %s274_s2 = inlined_call_operand.vmem [shape: f32[1,32], index: 2, kind: input, shape index: {}]   ;;  %s275_s4 = inlined_call_operand.vmem [shape: f32[1,128], index: 4, kind: input, shape index: {}]   ;;  %s276_s5 = inlined_call_operand.vmem [shape: bf16[16,128], index: 5, kind: output, shape index: {}]  }
   0x1   :  { %v182_v0 = vld [vmem:[%s271_s0] sm:$0xff]   ;;  %193 = vmatprep.subr.bf16.mxu0 %v213_v16  ;;  %v204_v17 = vld [vmem:[%s272_s3 + $0x8] sm:$0xff]   ;;  %197 = vmatprep.mubr.msk.bf16.mxu0 %vm214_vm1, %v213_v16 }
   0x2   :  { %v183_v1 = vunpack.c.l.bf16 %v182_v0  ;;  %v184_v2 = vunpack.c.h.bf16 %v182_v0  ;;  %v203_v15 = vld [vmem:[%s272_s3] sm:$0xff]  }
   0x3   :  { %194 = vmatpush3.bf16.msra.mxu0 %v203_v15  ;;  %v171_v26 = vld [vmem:[%s273_s1] ss:$0 sm:$0xff] }
   0x4   :  { %v26_v3 = vsel %vm25_vm0, %v183_v1, 0.0  ;;  %v29_v4 = vsel %vm25_vm0, %v184_v2, 0.0  ;;  %195 = vmatprep.subr.bf16.mxu0 %v213_v16  ;;  %v172_v30 = vld [vmem:[%s274_s2] ss:$0 sm:$0xff] }
   0x5   :  { %27 = vadd.xlane.f32.xlu0 %v26_v3  ;;  %v173_v35 = vld [vmem:[%s275_s4] ss:$0 sm:$0xff] }
   0x7   :  { %196 = vmatpush3.bf16.msra.mxu0 %v204_v17 }
   0x9   :  { %30 = vadd.xlane.f32.xlu0 %v29_v4 }
  0x92   :  { %v28_v5 = vpop.xlane.xlu0 %27 }
  0x93   :  { %v33_v6 = vmul.f32 0.03125, %v28_v5 }
  0x95   :  { %v35_v7 = vsub.f32 %v183_v1, %v33_v6 }
  0x96   :  { %v31_v8 = vpop.xlane.xlu0 %30 }
  0x97   :  { %v34_v9 = vmul.f32 0.03125, %v31_v8  ;;  %v37_v10 = vmul.f32 %v35_v7, %v35_v7 }
  0x99   :  { %v36_v11 = vsub.f32 %v184_v2, %v34_v9  ;;  %v39_v12 = vsel %vm25_vm0, %v37_v10, 0.0 }
  0x9a   :  { %40 = vadd.xlane.f32.xlu1 %v39_v12 }
  0x9b   :  { %v38_v13 = vmul.f32 %v36_v11, %v36_v11 }
  0x9d   :  { %v42_v14 = vsel %vm25_vm0, %v38_v13, 0.0 }
  0x9e   :  { %43 = vadd.xlane.f32.xlu1 %v42_v14 }
 0x127   :  { %v41_v18 = vpop.xlane.xlu1 %40 }
 0x128   :  { %v45_v19 = vmul.f32 0.03125, %v41_v18 }
 0x12a   :  { %v47_v20 = vadd.f32 1e-05, %v45_v19 }
 0x12b   :  { %v44_v21 = vpop.xlane.xlu1 %43 }
 0x12c   :  { %205 = vrsqrt.f32 %v47_v20  ;;  %v46_v22 = vmul.f32 0.03125, %v44_v21 }
 0x12e   :  { %v48_v23 = vadd.f32 1e-05, %v46_v22 }
 0x130   :  { %207 = vrsqrt.f32 %v48_v23 }
 0x136   :  { %v206_v24 = vpop.eup %205 }
 0x137   :  { %v51_v25 = vmul.f32 %v206_v24, %v35_v7 }
 0x139   :  { %v60_v29 = vmul.f32 %v171_v26, %v51_v25 }
 0x13a   :  { %v208_v27 = vpop.eup %207 }
 0x13b   :  { %v52_v28 = vmul.f32 %v208_v27, %v36_v11  ;;  %v69_v32 = vadd.f32 %v172_v30, %v60_v29 }
 0x13d   :  { %v61_v31 = vmul.f32 %v171_v26, %v52_v28 }
 0x13f   :  { %v70_v33 = vadd.f32 %v172_v30, %v61_v31 }
 0x141   :  { %v71_v34 = vpack.c.bf16 %v70_v33, %v69_v32 }
 0x143   :  { %198 = vmatmul.mubr.msk.bf16.vlgmr.msra.gmra.mrb[0].mxu0 %vm25_vm0, %v71_v34 }
 0x216   :  { %v132_v36 = vpop.f32.mrb[0].mxu0 }
 0x217   :  { %v133_v37 = vadd.f32 %v173_v35, %v132_v36  ;;  %v199_v38 = vpop.f32.mrb[1].mxu0 }
 0x218   :  { %v135_v39 = vpop.f32.mrb[2].mxu0 }
 0x219   :  { %v141_v40 = vmul.f32 %v133_v37, %v133_v37  ;;  %v136_v41 = vadd.f32 %v173_v35, %v135_v39  ;;  %v200_v42 = vpop.f32.mrb[3].mxu0  ;;  %v139_v55 = vmul.f32 0.5, %v133_v37 }
 0x21b   :  { %v143_v43 = vmul.f32 %v141_v40, %v133_v37  ;;  %v142_v44 = vmul.f32 %v136_v41, %v136_v41  ;;  %v140_v56 = vmul.f32 0.5, %v136_v41 }
 0x21d   :  { %v145_v45 = vmul.f32 0.044715, %v143_v43  ;;  %v144_v46 = vmul.f32 %v142_v44, %v136_v41 }
 0x21f   :  { %v147_v47 = vadd.f32 %v145_v45, %v133_v37  ;;  %v146_v48 = vmul.f32 0.044715, %v144_v46 }
 0x221   :  { %v149_v49 = vmul.f32 0.7978846, %v147_v47  ;;  %v148_v50 = vadd.f32 %v146_v48, %v136_v41 }
 0x223   :  { %209 = vtanh.f32 %v149_v49  ;;  %v150_v51 = vmul.f32 0.7978846, %v148_v50 }
 0x225   :  { %211 = vtanh.f32 %v150_v51 }
 0x22d   :  { %v210_v52 = vpop.eup %209 }
 0x22e   :  { %v153_v53 = vadd.f32 1.0, %v210_v52 }
 0x22f   :  { %v212_v54 = vpop.eup %211 }
 0x230   :  { %v154_v57 = vadd.f32 1.0, %v212_v54  ;;  %v155_v58 = vmul.f32 %v153_v53, %v139_v55 }
 0x232   :  { %v156_v59 = vmul.f32 %v154_v57, %v140_v56 }
 0x234   :  { %v188_v60 = vpack.c.bf16 %v156_v59, %v155_v58 }
 0x236   :  { %189 = vst [vmem:[%s276_s5] sm:$0xff] %v188_v60  }

// kernel: gpt_forward.13
= control target key start
LH: loop header
LB: loop body
LE: loop exit
PB: predicated region body
PF: predicated region fallthrough
CT: control target
= control target key end

     0   :  { %vm22_vm0 = vcmask 261120   ;;  %v163_v0 = vmov 0.0   ;;  %vm164_vm1 = vmmov 0   ;;  %vm127_vm2 = vcmask 257024   ;;  %s216_s1 = inlined_call_operand.vmem [shape: bf16[32,32], index: 1, kind: input, shape index: {}]   ;;  %s217_s0 = inlined_call_operand.vmem [shape: bf16[16,32], index: 0, kind: input, shape index: {}]   ;;  %s218_s3 = inlined_call_operand.vmem [shape: bf16[16,32], index: 3, kind: input, shape index: {}]   ;;  %s219_s2 = inlined_call_operand.vmem [shape: f32[1,32], index: 2, kind: input, shape index: {}]   ;;  %s220_s4 = inlined_call_operand.vmem [shape: bf16[16,32], index: 4, kind: output, shape index: {}]  }
   0x1   :  { %150 = vmatprep.subr.bf16.mxu0 %v163_v0  ;;  %v160_v1 = vld [vmem:[%s216_s1] sm:$0xff]   ;;  %154 = vmatprep.mubr.msk.bf16.mxu0 %vm164_vm1, %v163_v0  ;;  %23 = vst.msk [vmem:[#allocation2] sm:$0xff] %vm22_vm0, %v163_v0  ;;  %24 = vst.msk [vmem:[#allocation2 + $0x8] sm:$0xff] %vm22_vm0, %v163_v0  ;;  %v161_v2 = vld [vmem:[%s216_s1 + $0x8] sm:$0xff]  }
   0x2   :  { %151 = vmatpush3.bf16.msra.mxu0 %v160_v1  ;;  %v162_v3 = vld [vmem:[%s217_s0] sm:$0xff]  }
   0x3   :  { %152 = vmatprep.subr.bf16.mxu0 %v163_v0  ;;  %v144_v12 = vld [vmem:[%s218_s3] sm:$0xff]  }
   0x4   :  { %v138_v13 = vld [vmem:[%s219_s2] ss:$0 sm:$0xff]  ;;  %v145_v14 = vunpack.c.l.bf16 %v144_v12  ;;  %v146_v17 = vunpack.c.h.bf16 %v144_v12 }
   0x6   :  { %153 = vmatpush3.bf16.msra.mxu0 %v161_v2 }
   0x8   :  { %v25_v4 = vld [vmem:[#allocation2] sm:$0xff]  ;;  %v26_v6 = vld [vmem:[#allocation2 + $0x8] sm:$0xff] }
   0x9   :  { %155 = vmatmul.mubr.msk.bf16.vlgmr.msra.gmra.mrb[0].mxu0 %vm22_vm0, %v162_v3 }
  0xdc   :  { %v88_v5 = vpop.f32.mrb[0].mxu0 }
  0xdd   :  { %v95_v7 = vadd.f32 %v88_v5, %v25_v4  ;;  %v156_v8 = vpop.f32.mrb[1].mxu0 }
  0xde   :  { %v91_v9 = vpop.f32.mrb[2].mxu0 }
  0xdf   :  { %97 = vst.msk [vmem:[#allocation2] sm:$0xff] %vm22_vm0, %v95_v7  ;;  %v96_v10 = vadd.f32 %v91_v9, %v26_v6  ;;  %v157_v11 = vpop.f32.mrb[3].mxu0 }
  0xe1   :  { %98 = vst.msk [vmem:[#allocation2 + $0x8] sm:$0xff] %vm22_vm0, %v96_v10 }
  0xe6   :  { %v102_v15 = vld [vmem:[#allocation2] sm:$0xff] }
  0xe7   :  { %v111_v16 = vadd.f32 %v138_v13, %v102_v15 }
  0xe8   :  { %v103_v18 = vld [vmem:[#allocation2 + $0x8] sm:$0xff] }
  0xe9   :  { %v117_v19 = vadd.f32 %v145_v14, %v111_v16  ;;  %v112_v20 = vadd.f32 %v138_v13, %v103_v18 }
  0xeb   :  { %v141_v21 = vpack.c.bf16 %v117_v19, %v117_v19  ;;  %v118_v22 = vadd.f32 %v146_v17, %v112_v20 }
  0xed   :  { %128 = vst.msk [vmem:[%s220_s4] sm:$0xf] %vm127_vm2, %v141_v21  ;;  %v142_v23 = vpack.c.bf16 %v118_v22, %v118_v22 }
  0xef   :  { %129 = vst.msk [vmem:[%s220_s4 + $0x4] sm:$0xf] %vm127_vm2, %v142_v23 }

// kernel: gpt_forward.12
= control target key start
LH: loop header
LB: loop body
LE: loop exit
PB: predicated region body
PF: predicated region fallthrough
CT: control target
= control target key end

     0   :  { %s891_s12 = smov 0   ;;  %s893_s13 = smov 0   ;;  %s1002_s0 = inlined_call_operand.vmem [shape: bf16[2,8,96], index: 0, kind: input, shape index: {}, may-alias: {0,1,2}]   ;;  %s1003_s1 = inlined_call_operand.vmem [shape: bf16[2,8,96], index: 1, kind: input, shape index: {}, may-alias: {0,1,2}]   ;;  %s1004_s2 = inlined_call_operand.vmem [shape: bf16[2,8,96], index: 2, kind: input, shape index: {}, may-alias: {0,1,2}]   ;;  %s1005_s3 = inlined_call_operand.vmem [shape: bf16[2,8,32], index: 3, kind: output, shape index: {}]  }
   0x1   :  { %s895_s14 = smov 0  }
   0x2 LB: > { %s39_s15 = sadd.s32 1, %s855_s13  ;;  %p737_p0 = scmp.ge.s32.totalorder %s859_s14, 1  ;;  %s859_s14 = sphi %s895_s14, %s13_s14   ;;  %s855_s13 = sphi %s893_s13, %s1007_s13   ;;  %s851_s12 = sphi %s891_s12, %s1006_s12  }
   0x3   : > { %p41_p1 = scmp.ge.s32.totalorder %s39_s15, 2  ;;  %p197_p2 = scmp.lt.s32.totalorder %s859_s14, 3 }
   0x5   : > { %s1009_s15 = smov (%p41_p1, %s39_s15), 0  ;;  %p198_p3 = pnand %p737_p0, %p197_p2 }
   0x6   : > { %p239_p4 = scmp.lt.s32.totalorder (!%p198_p3), %s851_s12, 1  ;;  %vm277_vm0 = vcmask (!%p198_p3), 130048   ;;  %v861_v0 = vmov (!%p198_p3), 0.0   ;;  %vm862_vm1 = vmmov (!%p198_p3), 0   ;;  %s863_s20 = smov (!%p198_p3), 96   ;;  %vm272_vm2 = vcmask (!%p198_p3), 7168  }
   0x7   : > { %201 = sbr.rel (%p198_p3) target bundleno = 1565 (0x61d), region = 32  ;;  %762 = vmatprep.subr.bf16.mxu0 (!%p198_p3), %v861_v0  ;;  %279 = vst.msk [vmem:[#allocation4 + $0x8] sm:$0xff] (!%p198_p3), %vm277_vm0, %v861_v0  ;;  %278 = vst.msk [vmem:[#allocation4] sm:$0xff] (!%p198_p3), %vm277_vm0, %v861_v0  ;;  %764 = vmatprep.mubr.msk.bf16.mxu0 (!%p198_p3), %vm862_vm1, %v861_v0  ;;  %v864_v8 = vmov (!%p198_p3), -1e+30   ;;  %v285_v9 = vlaneseq (!%p198_p3)  ;;  %vm355_vm4 = vcmask (!%p198_p3), 64512  }
   0x8   : > { %768 = vmatprep.subr.bf16.mxu1 (!%p198_p3), %v861_v0  ;;  %770 = vmatprep.mubr.msk.bf16.mxu1 (!%p198_p3), %vm862_vm1, %v861_v0  ;;  %273 = vst.msk [vmem:[#allocation2] sm:$0xff] (!%p198_p3), %vm272_vm2, %v864_v8  ;;  %274 = vst.msk [vmem:[#allocation2 + $0x8] sm:$0xff] (!%p198_p3), %vm272_vm2, %v864_v8  ;;  %v865_v18 = vmov (!%p198_p3), 0   ;;  %s866_s27 = smov (!%p198_p3), 64   ;;  %s867_s28 = smov (!%p198_p3), 80   ;;  %vm395_vm5 = vcmask (!%p198_p3), 1043456  }
   0x9   : > { %275 = vst.msk [vmem:[#allocation3] sm:$0xff] (!%p198_p3), %vm272_vm2, %v861_v0  ;;  %276 = vst.msk [vmem:[#allocation3 + $0x8] sm:$0xff] (!%p198_p3), %vm272_vm2, %v861_v0  ;;  %v286_v10 = vshrl.u32 (!%p198_p3), %v285_v9, 7  ;;  %v291_v11 = vand.u32 (!%p198_p3), 127, %v285_v9  ;;  %820 = vset.pattern.permute.xlu1 (!%p198_p3), %v865_v18  ;;  %821 = vset.pattern.permute.xlu0 (!%p198_p3), %v865_v18  ;;  %s868_s29 = smov (!%p198_p3), 112   ;;  %s869_s30 = smov (!%p198_p3), 48  }
   0xa   : > { %vm604_vm6 = vcmask (!%p198_p3), 125952   ;;  %s870_s7 = smov (!%p198_p3), 16   ;;  %vm624_vm7 = vcmask (!%p198_p3), 257152  }
   0xb   : > { %vm294_vm3 = vcmp.le.s32.totalorder (!%p198_p3), %v291_v11, %v286_v10 }
   0xe   : > { %s1011_s12 = smov (!%p239_p4, %s851_s12), 1 }
   0xf   : > { %s919_s16 = sshll.u32 %s1011_s12, 2  ;;  %v954_v19 = vld [vmem:[#allocation2] sm:$0xff]  ;;  %v504_v51 = vld [vmem:[#allocation2 + $0x8] sm:$0xff] }
  0x10   : > { %s925_s19 = scalar_lea.vmem %s1003_s1, %s919_s16  ;;  %s932_s23 = scalar_lea.vmem %s1002_s0, %s919_s16  ;;  %v521_v10 = vld [vmem:[#allocation3 + $0x8] sm:$0xff] }
  0x11   : > { %v822_v1 = vld [vmem:[%s925_s19] ss:$0 sps:$4 sm:$0xff]   ;;  %s952_s26 = scalar_lea.vmem %s1004_s2, %s919_s16  ;;  %s266_s6 = scalar_lea.vmem %s1005_s3, %s919_s16 }
  0x12   : > { %304 = vrot.lane.b32.xlu0 %v822_v1, %s863_s20  ;;  %v295_v2 = vld [vmem:[%s932_s23] sm:$0xf] }
  0x13   : > { %v296_v3 = vunpack.c.l.bf16 %v295_v2  ;;  %v442_v21 = vld [vmem:[%s932_s23] sm:$0xf] }
  0x14   : > { %v823_v24 = vld [vmem:[%s952_s26] ss:$0 sps:$4 sm:$0xff]   ;;  %v443_v25 = vunpack.c.l.bf16 %v442_v21 }
  0x15   : > { %v297_v6 = vmul.f32 0.25, %v296_v3  ;;  %v446_v26 = vld [vmem:[%s925_s19] sm:$0xf] }
  0x16   : > { %v746_v27 = vcombine.low %v446_v26, %v446_v26  ;;  %v444_v28 = vmul.f32 0.25, %v443_v25  ;;  %v824_v50 = vld [vmem:[%s952_s26] ss:$0 sps:$4 sm:$0xff]   ;;  %v529_v25 = vld [vmem:[#allocation4 + $0x8] sm:$0xff] }
  0x17   : > { %v298_v7 = vpack.c.bf16 %v297_v6, %v297_v6 }
  0x18   : > { %v445_v29 = vpack.c.bf16 %v444_v28, %v444_v28 }
  0x84   : > { %v305_v4 = vpop.permute.xlu0 %304 }
  0x85   : > { %v311_v5 = vsel %vm277_vm0, %v305_v4, 0  ;;  %v371_v4 = vld [vmem:[#allocation3] sm:$0xff] }
  0x86   : > { %763 = vmatpush3.bf16.xpose.msra.mxu0 %v311_v5 }
  0x87   : > { %780 = vmatprep.subr.bf16.mxu0 %v861_v0 }
  0x8d   : > { %765 = vmatmul.mubr.msk.bf16.vlgmr.msra.gmra.mrb[0].mxu0 %vm277_vm0, %v298_v7 }
  0x8e   : > { %782 = vmatprep.mubr.msk.bf16.mxu0 %vm862_vm1, %v861_v0 }
 0x160   : > { %v347_v12 = vpop.f32.mrb[0].mxu0 }
 0x161   : > { %v353_v13 = vsel %vm294_vm3, %v347_v12, -1e+30  ;;  %v766_v14 = vpop.f32.mrb[1].mxu0 }
 0x162   : > { %v350_v15 = vpop.f32.mrb[2].mxu0  ;;  %v356_v16 = vsel %vm355_vm4, %v353_v13, -inf }
 0x163   : > { %357 = vmax.xlane.f32.xlu0 %v356_v16  ;;  %v767_v17 = vpop.f32.mrb[3].mxu0  ;;  %v379_v15 = vld [vmem:[#allocation4] sm:$0xff] }
 0x1f0   : > { %v358_v20 = vpop.xlane.xlu0 %357 }
 0x1f1   : > { %v958_v22 = vmax.f32 %v954_v19, %v358_v20 }
 0x1f3   : > { %v360_v23 = vsub.f32 %v954_v19, %v958_v22  ;;  %441 = vst.msk [vmem:[#allocation2] sm:$0xff] %vm272_vm2, %v958_v22  ;;  %365 = vperm.xlu1 %820, %v958_v22  }
 0x1f5   : > { %v361_v1 = vmul.f32 1.442695, %v360_v23 }
 0x1f7   : > { %390 = vrot.lane.b32.xlu1 %v823_v24, %s866_s27 }
 0x1fb   : > { %454 = vrot.lane.b32.xlu1 %v746_v27, %s867_s28 }
 0x1ff   : > { %449 = vrot.lane.b32.xlu1 %v445_v29, %s868_s29 }
 0x272   : > { %v366_v30 = vpop.permute.xlu1 %365 }
 0x273   : > { %v368_v31 = vsub.f32 %v353_v13, %v366_v30 }
 0x275   : > { %v369_v32 = vmul.f32 1.442695, %v368_v31 }
 0x276   : > { %v391_v33 = vpop.permute.xlu1 %390 }
 0x277   : > { %825 = vpow2.f32 %v369_v32  ;;  %v397_v34 = vsel %vm395_vm5, %v391_v33, 0 }
 0x278   : > { %769 = vmatpush3.bf16.msra.mxu1 %v397_v34 }
 0x279   : > { %774 = vmatprep.subr.bf16.mxu1 %v861_v0 }
 0x27a   : > { %v455_v35 = vpop.permute.xlu1 %454 }
 0x27b   : > { %v460_v37 = vsel %vm277_vm0, %v455_v35, 0 }
 0x27e   : > { %v450_v39 = vpop.permute.xlu1 %449 }
 0x281   : > { %v826_v36 = vpop.eup %825 }
 0x282   : > { %v386_v38 = vpack.c.bf16 %v826_v36, %v826_v36  ;;  %v373_v57 = vsel %vm355_vm4, %v826_v36, 0.0 }
 0x284   : > { %771 = vmatmul.mubr.msk.bf16.vlgmr.msra.gmra.mrb[0].mxu1 %vm355_vm4, %v386_v38 }
 0x285   : > { %775 = vmatpush3.bf16.xpose.msra.mxu1 %v460_v37  ;;  %776 = vmatprep.mubr.msk.bf16.mxu1 %vm862_vm1, %v861_v0 }
 0x28c   : > { %777 = vmatmul.mubr.msk.bf16.vlgmr.msra.gmra.mrb[4].mxu1 %vm277_vm0, %v450_v39 }
 0x357   : > { %v433_v40 = vpop.f32.mrb[0].mxu1 }
 0x358   : > { %v772_v41 = vpop.f32.mrb[1].mxu1 }
 0x359   : > { %v436_v42 = vpop.f32.mrb[2].mxu1 }
 0x35a   : > { %v773_v43 = vpop.f32.mrb[3].mxu1 }
 0x35f   : > { %v496_v44 = vpop.f32.mrb[4].mxu1 }
 0x360   : > { %v502_v45 = vsel %vm294_vm3, %v496_v44, -1e+30  ;;  %v778_v46 = vpop.f32.mrb[5].mxu1 }
 0x361   : > { %v499_v47 = vpop.f32.mrb[6].mxu1  ;;  %v505_v48 = vsel %vm355_vm4, %v502_v45, -inf }
 0x362   : > { %506 = vmax.xlane.f32.xlu1 %v505_v48  ;;  %v779_v49 = vpop.f32.mrb[7].mxu1 }
 0x373   : > { %540 = vrot.lane.b32.xlu1 %v824_v50, %s869_s30 }
 0x3ef   : > { %v507_v52 = vpop.xlane.xlu1 %506 }
 0x3f0   : > { %v508_v53 = vmax.f32 %v504_v51, %v507_v52 }
 0x3f2   : > { %v509_v54 = vsub.f32 %v504_v51, %v508_v53  ;;  %590 = vst.msk [vmem:[#allocation2 + $0x8] sm:$0xff] %vm272_vm2, %v508_v53  ;;  %514 = vperm.xlu0 %821, %v508_v53  }
 0x3f3   : > { %v541_v55 = vpop.permute.xlu1 %540 }
 0x3f4   : > { %v546_v56 = vsel %vm395_vm5, %v541_v55, 0  ;;  %v510_v0 = vmul.f32 1.442695, %v509_v54 }
 0x3f5   : > { %781 = vmatpush3.bf16.msra.mxu0 %v546_v56 }
 0x411   : > { %374 = vadd.xlane.f32.xlu0 %v373_v57 }
 0x471   : > { %v515_v58 = vpop.permute.xlu0 %514 }
 0x472   : > { %v517_v59 = vsub.f32 %v502_v45, %v515_v58 }
 0x474   : > { %v518_v60 = vmul.f32 1.442695, %v517_v59 }
 0x476   : > { %827 = vpow2.f32 %v518_v60 }
 0x477   : > { %829 = vpow2.f32 %v510_v0 }
 0x478   : > { %831 = vpow2.f32 %v361_v1 }
 0x480   : > { %v828_v61 = vpop.eup %827 }
 0x481   : > { %v523_v62 = vsel %vm355_vm4, %v828_v61, 0.0  ;;  %v536_v63 = vpack.c.bf16 %v828_v61, %v828_v61  ;;  %v830_v2 = vpop.eup %829 }
 0x482   : > { %524 = vadd.xlane.f32.xlu1 %v523_v62  ;;  %v832_v3 = vpop.eup %831  ;;  %v522_v11 = vmul.f32 %v830_v2, %v521_v10 }
 0x483   : > { %783 = vmatmul.mubr.msk.bf16.vlgmr.msra.gmra.mrb[4].mxu0 %vm355_vm4, %v536_v63  ;;  %v372_v5 = vmul.f32 %v832_v3, %v371_v4 }
 0x493   : > { %532 = vperm.xlu1 %820, %v830_v2  }
 0x497   : > { %382 = vperm.xlu1 %820, %v832_v3  }
 0x49e   : > { %v375_v6 = vpop.xlane.xlu0 %374 }
 0x49f   : > { %v376_v7 = vadd.f32 %v375_v6, %v372_v5 }
 0x4a1   : > { %378 = vst.msk [vmem:[#allocation3] sm:$0xff] %vm272_vm2, %v376_v7 }
 0x4a8   : > { %v594_v8 = vld [vmem:[#allocation3] sm:$0xff] }
 0x4a9   : > { %833 = vrcp.f32 %v594_v8 }
 0x4b3   : > { %v834_v9 = vpop.eup %833 }
 0x4b4   : > { %599 = vperm.xlu1 %820, %v834_v9  }
 0x50f   : > { %v525_v12 = vpop.xlane.xlu1 %524 }
 0x510   : > { %v526_v13 = vadd.f32 %v525_v12, %v522_v11 }
 0x512   : > { %527 = vst.msk [vmem:[#allocation3 + $0x8] sm:$0xff] %vm272_vm2, %v526_v13 }
 0x513   : > { %v533_v14 = vpop.permute.xlu1 %532 }
 0x514   : > { %v535_v26 = vmul.f32 %v533_v14, %v529_v25 }
 0x517   : > { %v383_v16 = vpop.permute.xlu1 %382 }
 0x518   : > { %v385_v17 = vmul.f32 %v383_v16, %v379_v15 }
 0x519   : > { %v607_v18 = vld [vmem:[#allocation3 + $0x8] sm:$0xff] }
 0x51a   : > { %v439_v19 = vadd.f32 %v433_v40, %v385_v17  ;;  %835 = vrcp.f32 %v607_v18 }
 0x51c   : > { %440 = vst.msk [vmem:[#allocation4] sm:$0xff] %vm277_vm0, %v439_v19 }
 0x523   : > { %v596_v21 = vld [vmem:[#allocation4] sm:$0xff] }
 0x524   : > { %v836_v20 = vpop.eup %835 }
 0x525   : > { %613 = vperm.xlu0 %821, %v836_v20  }
 0x533   : > { %v600_v22 = vpop.permute.xlu1 %599 }
 0x534   : > { %v602_v23 = vmul.f32 %v600_v22, %v596_v21 }
 0x536   : > { %v603_v24 = vpack.c.bf16 %v602_v23, %v602_v23 }
 0x538   : > { %605 = vst.msk [vmem:[%s266_s6] sm:$0xf] %vm604_vm6, %v603_v24 }
 0x556   : > { %v582_v27 = vpop.f32.mrb[4].mxu0 }
 0x557   : > { %v588_v28 = vadd.f32 %v582_v27, %v535_v26  ;;  %v784_v29 = vpop.f32.mrb[5].mxu0 }
 0x558   : > { %v585_v30 = vpop.f32.mrb[6].mxu0 }
 0x559   : > { %589 = vst.msk [vmem:[#allocation4 + $0x8] sm:$0xff] %vm277_vm0, %v588_v28  ;;  %v785_v31 = vpop.f32.mrb[7].mxu0 }
 0x560   : > { %v610_v33 = vld [vmem:[#allocation4 + $0x8] sm:$0xff] }
 0x5a4   : > { %v614_v32 = vpop.permute.xlu0 %613 }
 0x5a5   : > { %v616_v34 = vmul.f32 %v614_v32, %v610_v33 }
 0x5a7   : > { %v753_v35 = vpack.c.bf16 %v616_v34, %v616_v34 }
 0x5a9   : > { %621 = vrot.lane.b32.xlu1 %v753_v35, %s870_s7 }
 0x61b   : > { %v622_v36 = vpop.permute.xlu1 %621 }
 0x61c   : > { %625 = vst.msk [vmem:[%s266_s6] sm:$0xf] %vm624_vm7, %v622_v36 }
 0x61d PF: > { %s13_s14 = sadd.s32 1, %s859_s14   ;;  %s1006_s12 = smov %s855_s13 }
 0x61e   : > { %p10_p5 = scmp.ge.s32.totalorder %s13_s14, 4   ;;  %s1007_s13 = smov %s1009_s15 }
 0x620   :  { %12 = sbr.rel (!%p10_p5) target bundleno = 2 (0x2), region = 85 }

// kernel: gpt_forward.15
= control target key start
LH: loop header
LB: loop body
LE: loop exit
PB: predicated region body
PF: predicated region fallthrough
CT: control target
= control target key end

     0   :  { %vm22_vm0 = vcmask 261120   ;;  %v238_v0 = vmov 0.0   ;;  %vm239_vm1 = vmmov 0   ;;  %vm173_vm2 = vcmask 257024   ;;  %s308_s1 = inlined_call_operand.vmem [shape: bf16[128,32], index: 1, kind: input, shape index: {}]   ;;  %s309_s0 = inlined_call_operand.vmem [shape: bf16[16,128], index: 0, kind: input, shape index: {}]   ;;  %s310_s3 = inlined_call_operand.vmem [shape: bf16[16,32], index: 3, kind: input, shape index: {}]   ;;  %s311_s2 = inlined_call_operand.vmem [shape: f32[1,32], index: 2, kind: input, shape index: {}]   ;;  %s312_s4 = inlined_call_operand.vmem [shape: bf16[16,32], index: 4, kind: output, shape index: {}]  }
   0x1   :  { %207 = vmatprep.subr.bf16.mxu0 %v238_v0  ;;  %v229_v1 = vld [vmem:[%s308_s1] sm:$0xff]   ;;  %223 = vmatprep.mubr.msk.bf16.mxu0 %vm239_vm1, %v238_v0  ;;  %23 = vst.msk [vmem:[#allocation2] sm:$0xff] %vm22_vm0, %v238_v0  ;;  %24 = vst.msk [vmem:[#allocation2 + $0x8] sm:$0xff] %vm22_vm0, %v238_v0  ;;  %v230_v2 = vld [vmem:[%s308_s1 + $0x8] sm:$0xff]  }
   0x2   :  { %208 = vmatpush3.bf16.msra.mxu0 %v229_v1  ;;  %v231_v3 = vld [vmem:[%s308_s1 + $0x10] sm:$0xff]   ;;  %v232_v4 = vld [vmem:[%s308_s1 + $0x18] sm:$0xff]   ;;  %v233_v5 = vld [vmem:[%s308_s1 + $0x20] sm:$0xff]  }
   0x3   :  { %209 = vmatprep.subr.bf16.mxu0 %v238_v0  ;;  %v234_v6 = vld [vmem:[%s308_s1 + $0x28] sm:$0xff]   ;;  %v235_v7 = vld [vmem:[%s308_s1 + $0x30] sm:$0xff]   ;;  %v236_v8 = vld [vmem:[%s308_s1 + $0x38] sm:$0xff]  }
   0x4   :  { %v237_v9 = vld [vmem:[%s309_s0] sm:$0xff]  }
   0x5   :  { %v195_v18 = vld [vmem:[%s310_s3] sm:$0xff]  }
   0x6   :  { %210 = vmatpush3.bf16.msra.mxu0 %v230_v2  ;;  %v189_v19 = vld [vmem:[%s311_s2] ss:$0 sm:$0xff]  ;;  %v196_v20 = vunpack.c.l.bf16 %v195_v18  ;;  %v197_v23 = vunpack.c.h.bf16 %v195_v18 }
   0x7   :  { %211 = vmatprep.subr.bf16.mxu0 %v238_v0 }
   0x8   :  { %v25_v10 = vld [vmem:[#allocation2] sm:$0xff]  ;;  %v26_v12 = vld [vmem:[#allocation2 + $0x8] sm:$0xff] }
   0xa   :  { %212 = vmatpush3.bf16.msra.mxu0 %v231_v3 }
   0xb   :  { %213 = vmatprep.subr.bf16.mxu0 %v238_v0 }
   0xe   :  { %214 = vmatpush3.bf16.msra.mxu0 %v232_v4 }
   0xf   :  { %215 = vmatprep.subr.bf16.mxu0 %v238_v0 }
  0x12   :  { %216 = vmatpush3.bf16.msra.mxu0 %v233_v5 }
  0x13   :  { %217 = vmatprep.subr.bf16.mxu0 %v238_v0 }
  0x16   :  { %218 = vmatpush3.bf16.msra.mxu0 %v234_v6 }
  0x17   :  { %219 = vmatprep.subr.bf16.mxu0 %v238_v0 }
  0x1a   :  { %220 = vmatpush3.bf16.msra.mxu0 %v235_v7 }
  0x1b   :  { %221 = vmatprep.subr.bf16.mxu0 %v238_v0 }
  0x1e   :  { %222 = vmatpush3.bf16.msra.mxu0 %v236_v8 }
  0x21   :  { %224 = vmatmul.mubr.bf16.vlgmr.msra.gmra.mrb[0].mxu0 %v237_v9 }
  0xf4   :  { %v133_v11 = vpop.f32.mrb[0].mxu0 }
  0xf5   :  { %v140_v13 = vadd.f32 %v133_v11, %v25_v10  ;;  %v225_v14 = vpop.f32.mrb[1].mxu0 }
  0xf6   :  { %v136_v15 = vpop.f32.mrb[2].mxu0 }
  0xf7   :  { %143 = vst.msk [vmem:[#allocation2] sm:$0xff] %vm22_vm0, %v140_v13  ;;  %v141_v16 = vadd.f32 %v136_v15, %v26_v12  ;;  %v226_v17 = vpop.f32.mrb[3].mxu0 }
  0xf9   :  { %144 = vst.msk [vmem:[#allocation2 + $0x8] sm:$0xff] %vm22_vm0, %v141_v16 }
  0xfe   :  { %v148_v21 = vld [vmem:[#allocation2] sm:$0xff] }
  0xff   :  { %v157_v22 = vadd.f32 %v189_v19, %v148_v21 }
 0x100   :  { %v149_v24 = vld [vmem:[#allocation2 + $0x8] sm:$0xff] }
 0x101   :  { %v163_v25 = vadd.f32 %v196_v20, %v157_v22  ;;  %v158_v26 = vadd.f32 %v189_v19, %v149_v24 }
 0x103   :  { %v192_v27 = vpack.c.bf16 %v163_v25, %v163_v25  ;;  %v164_v28 = vadd.f32 %v197_v23, %v158_v26 }
 0x105   :  { %174 = vst.msk [vmem:[%s312_s4] sm:$0xf] %vm173_vm2, %v192_v27  ;;  %v193_v29 = vpack.c.bf16 %v164_v28, %v164_v28 }
 0x107   :  { %175 = vst.msk [vmem:[%s312_s4 + $0x4] sm:$0xf] %vm173_vm2, %v193_v29 }

// kernel: gpt_forward.21
= control target key start
LH: loop header
LB: loop body
LE: loop exit
PB: predicated region body
PF: predicated region fallthrough
CT: control target
= control target key end

     0   :  { %vm23_vm0 = vcmask 261120   ;;  %s385_s0 = inlined_call_operand.vmem [shape: bf16[16,32], index: 0, kind: input, shape index: {}]   ;;  %s386_s1 = inlined_call_operand.vmem [shape: f32[1,32], index: 1, kind: input, shape index: {}]   ;;  %s387_s2 = inlined_call_operand.vmem [shape: f32[1,32], index: 2, kind: input, shape index: {}]   ;;  %s388_s3 = inlined_call_operand.vmem [shape: bf16[128,32], index: 3, kind: input, shape index: {}]   ;;  %s389_s4 = inlined_call_operand.hbm [shape: f32[16,128], index: 4, kind: output, shape index: {}]  }
   0x1   :  { %v224_v0 = vld [vmem:[%s385_s0] sm:$0xff]  }
   0x2   :  { %v225_v1 = vunpack.c.l.bf16 %v224_v0  ;;  %v226_v2 = vunpack.c.h.bf16 %v224_v0 }
   0x4   :  { %v24_v3 = vsel %vm23_vm0, %v225_v1, 0.0  ;;  %v27_v4 = vsel %vm23_vm0, %v226_v2, 0.0 }
   0x5   :  { %25 = vadd.xlane.f32.xlu0 %v24_v3 }
   0x6   :  { %9 = vsyncpa [#allocation3], 0  ;;  %v261_v5 = vld [vmem:[%s388_s3] sm:$0xff]   ;;  %v297_v6 = vmov 0.0   ;;  %v262_v8 = vld [vmem:[%s388_s3 + $0x8] sm:$0xff]   ;;  %vm298_vm1 = vmmov 0  }
   0x7   :  { %236 = vmatprep.subr.bf16.mxu0 %v297_v6  ;;  %v130_v7 = vsel %vm23_vm0, %v261_v5, 0  ;;  %v133_v9 = vsel %vm23_vm0, %v262_v8, 0  ;;  %v263_v10 = vld [vmem:[%s388_s3 + $0x10] sm:$0xff]   ;;  %v264_v12 = vld [vmem:[%s388_s3 + $0x18] sm:$0xff]   ;;  %v265_v14 = vld [vmem:[%s388_s3 + $0x20] sm:$0xff]   ;;  %252 = vmatprep.mubr.msk.bf16.mxu0 %vm298_vm1, %v297_v6  ;;  %s299_s9 = smov [#allocation2]  }
   0x8   :  { %237 = vmatpush3.bf16.xpose.msra.mxu0 %v130_v7  ;;  %v136_v11 = vsel %vm23_vm0, %v263_v10, 0  ;;  %v139_v13 = vsel %vm23_vm0, %v264_v12, 0  ;;  %v142_v15 = vsel %vm23_vm0, %v265_v14, 0  ;;  %v266_v26 = vld [vmem:[%s388_s3 + $0x28] sm:$0xff]   ;;  %v267_v28 = vld [vmem:[%s388_s3 + $0x30] sm:$0xff]   ;;  %v268_v30 = vld [vmem:[%s388_s3 + $0x38] sm:$0xff]  }
   0x9   :  { %28 = vadd.xlane.f32.xlu0 %v27_v4  ;;  %238 = vmatprep.subr.bf16.mxu0 %v297_v6  ;;  %v145_v27 = vsel %vm23_vm0, %v266_v26, 0  ;;  %v148_v29 = vsel %vm23_vm0, %v267_v28, 0  ;;  %v151_v31 = vsel %vm23_vm0, %v268_v30, 0  ;;  %v212_v40 = vld [vmem:[%s386_s1] ss:$0 sm:$0xff]  ;;  %s201_s10 = sshll.u32 %s299_s9, 4  ;;  %s202_s10 = int_to_ptr.vmem [resolvable:$true] %s201_s10 }
   0xa   :  { %v213_v44 = vld [vmem:[%s387_s2] ss:$0 sm:$0xff]  ;;  %s273_s1 = scalar_lea.vmem %s202_s10, 256  ;;  %p278_p1 = scmp.lt.s32.totalorder %s202_s10, %s202_s10 }
   0xb   :  { %p274_p0 = scmp.ne.s32.totalorder %s202_s10, %s273_s1  ;;  %p279_p2 = scmp.lt.s32.totalorder %s273_s1, %s273_s1 }
   0xd   :  { %p280_p3 = por %p279_p2, %p278_p1 }
   0xf   :  { %p281_p4 = pnand %p280_p3, %p274_p0 }
  0x10   :  { %239 = vmatpush3.bf16.xpose.msra.mxu0 %v133_v9 }
  0x11   :  { %240 = vmatprep.subr.bf16.mxu0 %v297_v6 }
  0x18   :  { %241 = vmatpush3.bf16.xpose.msra.mxu0 %v136_v11 }
  0x19   :  { %242 = vmatprep.subr.bf16.mxu0 %v297_v6 }
  0x20   :  { %243 = vmatpush3.bf16.xpose.msra.mxu0 %v139_v13 }
  0x21   :  { %244 = vmatprep.subr.bf16.mxu0 %v297_v6 }
  0x28   :  { %245 = vmatpush3.bf16.xpose.msra.mxu0 %v142_v15 }
  0x29   :  { %246 = vmatprep.subr.bf16.mxu0 %v297_v6 }
  0x30   :  { %247 = vmatpush3.bf16.xpose.msra.mxu0 %v145_v27 }
  0x31   :  { %248 = vmatprep.subr.bf16.mxu0 %v297_v6 }
  0x38   :  { %249 = vmatpush3.bf16.xpose.msra.mxu0 %v148_v29 }
  0x39   :  { %250 = vmatprep.subr.bf16.mxu0 %v297_v6 }
  0x40   :  { %251 = vmatpush3.bf16.xpose.msra.mxu0 %v151_v31 }
  0x92   :  { %v26_v16 = vpop.xlane.xlu0 %25 }
  0x93   :  { %v31_v17 = vmul.f32 0.03125, %v26_v16 }
  0x95   :  { %v33_v18 = vsub.f32 %v225_v1, %v31_v17 }
  0x96   :  { %v29_v19 = vpop.xlane.xlu0 %28 }
  0x97   :  { %v32_v20 = vmul.f32 0.03125, %v29_v19  ;;  %v35_v21 = vmul.f32 %v33_v18, %v33_v18 }
  0x99   :  { %v34_v22 = vsub.f32 %v226_v2, %v32_v20  ;;  %v37_v23 = vsel %vm23_vm0, %v35_v21, 0.0 }
  0x9a   :  { %38 = vadd.xlane.f32.xlu1 %v37_v23 }
  0x9b   :  { %v36_v24 = vmul.f32 %v34_v22, %v34_v22 }
  0x9d   :  { %v40_v25 = vsel %vm23_vm0, %v36_v24, 0.0 }
  0x9e   :  { %41 = vadd.xlane.f32.xlu1 %v40_v25 }
 0x127   :  { %v39_v32 = vpop.xlane.xlu1 %38 }
 0x128   :  { %v43_v33 = vmul.f32 0.03125, %v39_v32 }
 0x12a   :  { %v45_v34 = vadd.f32 1e-05, %v43_v33 }
 0x12b   :  { %v42_v35 = vpop.xlane.xlu1 %41 }
 0x12c   :  { %269 = vrsqrt.f32 %v45_v34  ;;  %v44_v36 = vmul.f32 0.03125, %v42_v35 }
 0x12e   :  { %v46_v37 = vadd.f32 1e-05, %v44_v36 }
 0x130   :  { %271 = vrsqrt.f32 %v46_v37 }
 0x136   :  { %v270_v38 = vpop.eup %269 }
 0x137   :  { %v49_v39 = vmul.f32 %v270_v38, %v33_v18 }
 0x139   :  { %v58_v43 = vmul.f32 %v212_v40, %v49_v39 }
 0x13a   :  { %v272_v41 = vpop.eup %271 }
 0x13b   :  { %v50_v42 = vmul.f32 %v272_v41, %v34_v22  ;;  %v67_v46 = vadd.f32 %v213_v44, %v58_v43 }
 0x13d   :  { %v59_v45 = vmul.f32 %v212_v40, %v50_v42 }
 0x13f   :  { %v68_v47 = vadd.f32 %v213_v44, %v59_v45 }
 0x141   :  { %v69_v48 = vpack.c.bf16 %v68_v47, %v67_v46 }
 0x143   :  { %253 = vmatmul.mubr.msk.bf16.vlgmr.msra.gmra.mrb[0].mxu0 %vm23_vm0, %v69_v48 }
 0x216   :  { %v187_v49 = vpop.f32.mrb[0].mxu0 }
 0x217   :  { %194 = vst [vmem:[#allocation2] sm:$0xff] %v187_v49  ;;  %v254_v50 = vpop.f32.mrb[1].mxu0 }
 0x218   :  { %v190_v51 = vpop.f32.mrb[2].mxu0 }
 0x219   :  { %195 = vst [vmem:[#allocation2 + $0x8] sm:$0xff] %v190_v51  ;;  %v255_v52 = vpop.f32.mrb[3].mxu0 }
 0x21a   :  { %284 = shalt.err (!%p281_p4)
}
 0x21b   :  { %s285_s12 = scalar_lea.hbm %s389_s4, 256 }
 0x21c   :  { %p286_p5 = scmp.ne.s32.totalorder %s389_s4, %s285_s12  ;;  %p289_p6 = scmp.lt.u32.totalorder %s285_s12, %s389_s4 }
 0x21e   :  { %p291_p7 = pnand %p289_p6, %p286_p5 }
 0x220   :  { %294 = shalt.err (!%p291_p7)
}
 0x221   :  { %s300_s17 = smov 128   ;;  %s301_s18 = smov 8  }
 0x222   :  { %207 = dma.vmem_to_hbm [thread:$0]  %s202_s10, 256, %s389_s4, [#allocation3], %s300_s17, %s300_s17, %s301_s18  }
 0x223   :  { %295 = dma.done.wait [#allocation3], 256  }
 0x224   :  { %296 = vsyncadd [#allocation3], 4294967040 }
 0x225   :  { %211 = vsyncpa [#allocation3], 1 }

</bundles_post_ra>
